<compile_context>
chip_gen: v6e
topology: v6e:2x2x1
jax: 0.10.0
libtpu: 0.0.40
codegen_flags: <defaults>
</compile_context>

<pallas_src>
import functools
import math

import jax
import jax.numpy as jnp
from jax.experimental import pallas as pl
from jax.experimental.pallas import tpu as pltpu


# ---------------------------------------------------------------------------
# In-kernel math helpers (f32 elementwise)
# ---------------------------------------------------------------------------
def _gelu_exact(x):
    # PyTorch activation='gelu' (approximate='none') -> erf formulation.
    return 0.5 * x * (1.0 + jax.lax.erf(x * (1.0 / math.sqrt(2.0))))


def _layer_norm(x, w, b, eps=1e-5):
    mu = jnp.mean(x, axis=-1, keepdims=True)
    var = jnp.mean((x - mu) ** 2, axis=-1, keepdims=True)
    return (x - mu) * jax.lax.rsqrt(var + eps) * w + b


# ---------------------------------------------------------------------------
# Fused kernel: embedding + positional encoding + num_layers encoder layers
# ---------------------------------------------------------------------------
def _fused_encoder_kernel(xp_ref, we_ref, peb_ref,
                          wq_ref, wk_ref, wv_ref,
                          bq_ref, bk_ref, bv_ref,
                          wo_ref, bo_ref,
                          ln1w_ref, ln1b_ref, ln2w_ref, ln2b_ref,
                          w1_ref, b1_ref, w2_ref, b2_ref,
                          o_ref, *, num_layers, num_heads):
    T, H = o_ref.shape
    hd = H // num_heads
    scale = 1.0 / math.sqrt(hd)

    # ---- patch embedding (Conv1d stride=patch as one matmul) + pos. enc. ----
    xp = xp_ref[...].astype(jnp.bfloat16)                       # (T, P*D_in)
    x = jnp.dot(xp, we_ref[...],
                preferred_element_type=jnp.float32) + peb_ref[...]   # (T, H) f32

    # ---- transformer encoder layers (pre-norm, eval-mode dropout = id) ----
    for li in range(num_layers):
        # self-attention block
        h = _layer_norm(x, ln1w_ref[li], ln1b_ref[li])
        hb = h.astype(jnp.bfloat16)
        q = jnp.dot(hb, wq_ref[li], preferred_element_type=jnp.float32) + bq_ref[li]
        k = jnp.dot(hb, wk_ref[li], preferred_element_type=jnp.float32) + bk_ref[li]
        v = jnp.dot(hb, wv_ref[li], preferred_element_type=jnp.float32) + bv_ref[li]

        head_outs = []
        for hh in range(num_heads):
            sl = slice(hh * hd, (hh + 1) * hd)
            qh = q[:, sl] * scale                                # (T, hd)
            kh = k[:, sl]
            vh = v[:, sl]
            s = jnp.dot(qh, kh.T, preferred_element_type=jnp.float32)   # (T, T)
            s = s - jnp.max(s, axis=-1, keepdims=True)
            p = jnp.exp(s)
            p = p * pl.reciprocal(jnp.sum(p, axis=-1, keepdims=True), approx=True)
            head_outs.append(jnp.dot(p, vh, preferred_element_type=jnp.float32))
        attn = jnp.concatenate(head_outs, axis=-1)               # (T, H)
        attn = jnp.dot(attn.astype(jnp.bfloat16), wo_ref[li],
                       preferred_element_type=jnp.float32) + bo_ref[li]
        x = x + attn

        # feed-forward block
        h2 = _layer_norm(x, ln2w_ref[li], ln2b_ref[li])
        ff = jnp.dot(h2.astype(jnp.bfloat16), w1_ref[li],
                     preferred_element_type=jnp.float32) + b1_ref[li]
        ff = _gelu_exact(ff)
        ff = jnp.dot(ff.astype(jnp.bfloat16), w2_ref[li],
                     preferred_element_type=jnp.float32) + b2_ref[li]
        x = x + ff

    o_ref[...] = x.astype(o_ref.dtype)


# ---------------------------------------------------------------------------
# Wrapper
# ---------------------------------------------------------------------------
def _const_spec(a):
    # full-array block, constant over the batch grid (stays resident in VMEM)
    return pl.BlockSpec(a.shape, lambda b: (0,) * a.ndim)


def base_encoder_forward(x, params, *, patch_size, num_heads):
    """x: (B, S, D_in)  ->  (B, S // patch_size, H)"""
    conv_w, conv_b, pe = params["conv_w"], params["conv_b"], params["pe"]
    B, S, D_in = x.shape
    H = conv_w.shape[0]
    T = S // patch_size
    PD = patch_size * D_in
    num_layers = params["wq"].shape[0]
    FF = params["w1"].shape[-1]
    nh = num_heads
    hd = H // nh

    # patchify: xp[b, t, k*D_in + c] = x[b, t*P + k, c]
    xp = x[:, :T * patch_size, :].reshape(B, T, PD)
    # conv weight (H, D_in, P) -> (P*D_in, H) so that patch @ W == conv output
    we = jnp.transpose(conv_w, (2, 1, 0)).reshape(PD, H).astype(jnp.bfloat16)
    # fold conv bias into the positional encoding (one add instead of two)
    peb = (pe[:T, :] + conv_b[None, :]).astype(jnp.float32)

    weights = [
        we, peb,
        params["wq"], params["wk"], params["wv"],
        params["bq"], params["bk"], params["bv"],
        params["wo"], params["bo"],
        params["ln1w"], params["ln1b"], params["ln2w"], params["ln2b"],
        params["w1"], params["b1"], params["w2"], params["b2"],
    ]

    flops = 2 * B * (T * PD * H
                     + num_layers * (4 * T * H * H
                                     + 2 * nh * T * T * hd
                                     + 2 * T * H * FF))
    transcendentals = B * num_layers * (nh * T * T + T * FF + nh * T + 2 * T)
    bytes_accessed = int(xp.nbytes + sum(w.nbytes for w in weights)
                         + B * T * H * 4)

    kernel = functools.partial(_fused_encoder_kernel,
                               num_layers=num_layers, num_heads=num_heads)
    return pl.pallas_call(
        kernel,
        out_shape=jax.ShapeDtypeStruct((B, T, H), jnp.float32),
        grid=(B,),
        in_specs=[pl.BlockSpec((None, T, PD), lambda b: (b, 0, 0))]
                 + [_const_spec(w) for w in weights],
        out_specs=pl.BlockSpec((None, T, H), lambda b: (b, 0, 0)),
        compiler_params=pltpu.CompilerParams(
            dimension_semantics=("parallel",)),
        cost_estimate=pl.CostEstimate(flops=flops,
                                      transcendentals=transcendentals,
                                      bytes_accessed=bytes_accessed),
    )(xp, *weights)


# ---------------------------------------------------------------------------
# Deterministic parameter construction
# ---------------------------------------------------------------------------
def make_positional_encoding(max_seq_len, hidden_dim):
    # TODO(synk): PositionalEncoding class not shown in the module source;
    # assuming the standard fixed sinusoidal encoding added to the input.
    position = jnp.arange(max_seq_len, dtype=jnp.float32)[:, None]
    div_term = jnp.exp(
        jnp.arange(0, hidden_dim, 2, dtype=jnp.float32)
        * (-math.log(10000.0) / hidden_dim))
    pe = jnp.zeros((max_seq_len, hidden_dim), dtype=jnp.float32)
    pe = pe.at[:, 0::2].set(jnp.sin(position * div_term))
    pe = pe.at[:, 1::2].set(jnp.cos(position * div_term))
    return pe


def init_params(key, input_dim, patch_size, hidden_dim, num_layers, max_seq_len):
    H = hidden_dim
    FF = hidden_dim  # dim_feedforward == hidden_dim in the module
    keys = jax.random.split(key, 2 + num_layers)
    scale = 0.05

    conv_w = scale * jax.random.normal(keys[0], (H, input_dim, patch_size), jnp.float32)
    conv_b = scale * jax.random.normal(keys[1], (H,), jnp.float32)

    per_layer = {n: [] for n in ("wq", "wk", "wv", "bq", "bk", "bv",
                                 "wo", "bo", "ln1w", "ln1b", "ln2w", "ln2b",
                                 "w1", "b1", "w2", "b2")}
    for li in range(num_layers):
        lk = jax.random.split(keys[2 + li], 8)
        per_layer["wq"].append(scale * jax.random.normal(lk[0], (H, H), jnp.float32))
        per_layer["wk"].append(scale * jax.random.normal(lk[1], (H, H), jnp.float32))
        per_layer["wv"].append(scale * jax.random.normal(lk[2], (H, H), jnp.float32))
        per_layer["bq"].append(scale * jax.random.normal(lk[3], (1, H), jnp.float32))
        per_layer["bk"].append(jnp.zeros((1, H), jnp.float32))
        per_layer["bv"].append(jnp.zeros((1, H), jnp.float32))
        per_layer["wo"].append(scale * jax.random.normal(lk[4], (H, H), jnp.float32))
        per_layer["bo"].append(scale * jax.random.normal(lk[5], (1, H), jnp.float32))
        per_layer["ln1w"].append(jnp.ones((1, H), jnp.float32))
        per_layer["ln1b"].append(jnp.zeros((1, H), jnp.float32))
        per_layer["ln2w"].append(jnp.ones((1, H), jnp.float32))
        per_layer["ln2b"].append(jnp.zeros((1, H), jnp.float32))
        per_layer["w1"].append(scale * jax.random.normal(lk[6], (H, FF), jnp.float32))
        per_layer["b1"].append(jnp.zeros((1, FF), jnp.float32))
        per_layer["w2"].append(scale * jax.random.normal(lk[7], (FF, H), jnp.float32))
        per_layer["b2"].append(jnp.zeros((1, H), jnp.float32))

    params = {"conv_w": conv_w, "conv_b": conv_b,
              "pe": make_positional_encoding(max_seq_len, H)}
    bf16_names = {"wq", "wk", "wv", "wo", "w1", "w2"}   # MXU operands
    for name, vals in per_layer.items():
        stacked = jnp.stack(vals, axis=0)
        params[name] = stacked.astype(jnp.bfloat16) if name in bf16_names else stacked
    return params


# ---------------------------------------------------------------------------
if __name__ == "__main__":
    # BaseEncoder(input_dim=4, patch_size=2, hidden_dim=32, num_layers=2,
    #             num_heads=4, max_seq_len=16); batch=2, seq_len=16 -> T=8
    input_dim, patch_size, hidden_dim = 4, 2, 32
    num_layers, num_heads, max_seq_len = 2, 4, 16
    batch, seq_len = 2, 16

    key = jax.random.PRNGKey(0)
    pkey, xkey = jax.random.split(key)
    params = init_params(pkey, input_dim, patch_size, hidden_dim,
                         num_layers, max_seq_len)
    x = jax.random.normal(xkey, (batch, seq_len, input_dim), jnp.float32)

    out = base_encoder_forward(x, params, patch_size=patch_size,
                               num_heads=num_heads)
    out = jax.block_until_ready(out)
    assert out.shape == (batch, seq_len // patch_size, hidden_dim)
    assert bool(jnp.all(jnp.isfinite(out)))
    print("KERNEL_OK")
</pallas_src>

<mosaic_0001>
module attributes {stable_mosaic.version = 11 : i64} {
  func.func @_fused_encoder_kernel(%arg0: i32, %arg1: memref<1x8x8xf32, #tpu.memory_space<vmem>>, %arg2: memref<8x32xbf16, #tpu.memory_space<vmem>>, %arg3: memref<8x32xf32, #tpu.memory_space<vmem>>, %arg4: memref<2x32x32xbf16, #tpu.memory_space<vmem>>, %arg5: memref<2x32x32xbf16, #tpu.memory_space<vmem>>, %arg6: memref<2x32x32xbf16, #tpu.memory_space<vmem>>, %arg7: memref<2x1x32xf32, #tpu.memory_space<vmem>>, %arg8: memref<2x1x32xf32, #tpu.memory_space<vmem>>, %arg9: memref<2x1x32xf32, #tpu.memory_space<vmem>>, %arg10: memref<2x32x32xbf16, #tpu.memory_space<vmem>>, %arg11: memref<2x1x32xf32, #tpu.memory_space<vmem>>, %arg12: memref<2x1x32xf32, #tpu.memory_space<vmem>>, %arg13: memref<2x1x32xf32, #tpu.memory_space<vmem>>, %arg14: memref<2x1x32xf32, #tpu.memory_space<vmem>>, %arg15: memref<2x1x32xf32, #tpu.memory_space<vmem>>, %arg16: memref<2x32x32xbf16, #tpu.memory_space<vmem>>, %arg17: memref<2x1x32xf32, #tpu.memory_space<vmem>>, %arg18: memref<2x32x32xbf16, #tpu.memory_space<vmem>>, %arg19: memref<2x1x32xf32, #tpu.memory_space<vmem>>, %arg20: memref<1x8x32xf32, #tpu.memory_space<vmem>>) attributes {dimension_semantics = [#tpu.dimension_semantics<parallel>], iteration_bounds = array<i64: 2>, scalar_prefetch = 0 : i64, scratch_operands = 0 : i64, tpu.core_type = #tpu.core_type<tc>, window_params = [{transform_indices = @transform_0, window_bounds = array<i64: 1, 8, 8>}, {pipeline_mode = #tpu.pipeline_mode<synchronous>, transform_indices = @transform_1, window_bounds = array<i64: 8, 32>}, {pipeline_mode = #tpu.pipeline_mode<synchronous>, transform_indices = @transform_2, window_bounds = array<i64: 8, 32>}, {pipeline_mode = #tpu.pipeline_mode<synchronous>, transform_indices = @transform_3, window_bounds = array<i64: 2, 32, 32>}, {pipeline_mode = #tpu.pipeline_mode<synchronous>, transform_indices = @transform_4, window_bounds = array<i64: 2, 32, 32>}, {pipeline_mode = #tpu.pipeline_mode<synchronous>, transform_indices = @transform_5, window_bounds = array<i64: 2, 32, 32>}, {pipeline_mode = #tpu.pipeline_mode<synchronous>, transform_indices = @transform_6, window_bounds = array<i64: 2, 1, 32>}, {pipeline_mode = #tpu.pipeline_mode<synchronous>, transform_indices = @transform_7, window_bounds = array<i64: 2, 1, 32>}, {pipeline_mode = #tpu.pipeline_mode<synchronous>, transform_indices = @transform_8, window_bounds = array<i64: 2, 1, 32>}, {pipeline_mode = #tpu.pipeline_mode<synchronous>, transform_indices = @transform_9, window_bounds = array<i64: 2, 32, 32>}, {pipeline_mode = #tpu.pipeline_mode<synchronous>, transform_indices = @transform_10, window_bounds = array<i64: 2, 1, 32>}, {pipeline_mode = #tpu.pipeline_mode<synchronous>, transform_indices = @transform_11, window_bounds = array<i64: 2, 1, 32>}, {pipeline_mode = #tpu.pipeline_mode<synchronous>, transform_indices = @transform_12, window_bounds = array<i64: 2, 1, 32>}, {pipeline_mode = #tpu.pipeline_mode<synchronous>, transform_indices = @transform_13, window_bounds = array<i64: 2, 1, 32>}, {pipeline_mode = #tpu.pipeline_mode<synchronous>, transform_indices = @transform_14, window_bounds = array<i64: 2, 1, 32>}, {pipeline_mode = #tpu.pipeline_mode<synchronous>, transform_indices = @transform_15, window_bounds = array<i64: 2, 32, 32>}, {pipeline_mode = #tpu.pipeline_mode<synchronous>, transform_indices = @transform_16, window_bounds = array<i64: 2, 1, 32>}, {pipeline_mode = #tpu.pipeline_mode<synchronous>, transform_indices = @transform_17, window_bounds = array<i64: 2, 32, 32>}, {pipeline_mode = #tpu.pipeline_mode<synchronous>, transform_indices = @transform_18, window_bounds = array<i64: 2, 1, 32>}, {transform_indices = @transform_19, window_bounds = array<i64: 1, 8, 32>}]} {
    %c0 = arith.constant 0 : index
    %c0_0 = arith.constant 0 : index
    %c0_1 = arith.constant 0 : index
    %0 = vector.load %arg1[%c0, %c0_0, %c0_1] : memref<1x8x8xf32, #tpu.memory_space<vmem>>, vector<1x8x8xf32>
    %1 = vector.shape_cast %0 : vector<1x8x8xf32> to vector<8x8xf32>
    %2 = arith.truncf %1 : vector<8x8xf32> to vector<8x8xbf16>
    %c0_2 = arith.constant 0 : index
    %c0_3 = arith.constant 0 : index
    %3 = vector.load %arg2[%c0_2, %c0_3] : memref<8x32xbf16, #tpu.memory_space<vmem>>, vector<8x32xbf16>
    %cst = arith.constant dense<0.000000e+00> : vector<8x32xf32>
    %4 = tpu.matmul %2, %3, %cst {dimension_numbers = #tpu.dot_dimension_numbers<[1], [0], [0], [1], [0, 0, 1, 1], [], []>} : vector<8x8xbf16>, vector<8x32xbf16>, vector<8x32xf32> -> vector<8x32xf32>
    %c0_4 = arith.constant 0 : index
    %c0_5 = arith.constant 0 : index
    %5 = vector.load %arg3[%c0_4, %c0_5] : memref<8x32xf32, #tpu.memory_space<vmem>>, vector<8x32xf32>
    %6 = arith.addf %4, %5 : vector<8x32xf32>
    %c0_6 = arith.constant 0 : index
    %c0_7 = arith.constant 0 : index
    %c0_8 = arith.constant 0 : index
    %7 = vector.load %arg12[%c0_6, %c0_7, %c0_8] : memref<2x1x32xf32, #tpu.memory_space<vmem>>, vector<1x1x32xf32>
    %8 = vector.shape_cast %7 : vector<1x1x32xf32> to vector<1x32xf32>
    %c0_9 = arith.constant 0 : index
    %c0_10 = arith.constant 0 : index
    %c0_11 = arith.constant 0 : index
    %9 = vector.load %arg13[%c0_9, %c0_10, %c0_11] : memref<2x1x32xf32, #tpu.memory_space<vmem>>, vector<1x1x32xf32>
    %10 = vector.shape_cast %9 : vector<1x1x32xf32> to vector<1x32xf32>
    %cst_12 = arith.constant dense<0.000000e+00> : vector<8xf32>
    %11 = vector.multi_reduction <add>, %6, %cst_12 [1] : vector<8x32xf32> to vector<8xf32>
    %12 = vector.shape_cast %11 : vector<8xf32> to vector<8x1xf32>
    %cst_13 = arith.constant 3.200000e+01 : f32
    %13 = vector.broadcast %cst_13 : f32 to vector<8x1xf32>
    %14 = arith.divf %12, %13 : vector<8x1xf32>
    %15 = vector.broadcast %14 : vector<8x1xf32> to vector<8x32xf32>
    %16 = arith.subf %6, %15 : vector<8x32xf32>
    %17 = arith.mulf %16, %16 : vector<8x32xf32>
    %cst_14 = arith.constant dense<0.000000e+00> : vector<8xf32>
    %18 = vector.multi_reduction <add>, %17, %cst_14 [1] : vector<8x32xf32> to vector<8xf32>
    %19 = vector.shape_cast %18 : vector<8xf32> to vector<8x1xf32>
    %cst_15 = arith.constant 3.200000e+01 : f32
    %20 = vector.broadcast %cst_15 : f32 to vector<8x1xf32>
    %21 = arith.divf %19, %20 : vector<8x1xf32>
    %22 = vector.broadcast %14 : vector<8x1xf32> to vector<8x32xf32>
    %23 = arith.subf %6, %22 : vector<8x32xf32>
    %cst_16 = arith.constant 9.99999974E-6 : f32
    %24 = vector.broadcast %cst_16 : f32 to vector<8x1xf32>
    %25 = arith.addf %21, %24 : vector<8x1xf32>
    %26 = math.rsqrt %25 : vector<8x1xf32>
    %27 = vector.broadcast %26 : vector<8x1xf32> to vector<8x32xf32>
    %28 = arith.mulf %23, %27 : vector<8x32xf32>
    %29 = vector.broadcast %8 : vector<1x32xf32> to vector<8x32xf32>
    %30 = arith.mulf %28, %29 : vector<8x32xf32>
    %31 = vector.broadcast %10 : vector<1x32xf32> to vector<8x32xf32>
    %32 = arith.addf %30, %31 : vector<8x32xf32>
    %33 = arith.truncf %32 : vector<8x32xf32> to vector<8x32xbf16>
    %c0_17 = arith.constant 0 : index
    %c0_18 = arith.constant 0 : index
    %c0_19 = arith.constant 0 : index
    %34 = vector.load %arg4[%c0_17, %c0_18, %c0_19] : memref<2x32x32xbf16, #tpu.memory_space<vmem>>, vector<1x32x32xbf16>
    %35 = vector.shape_cast %34 : vector<1x32x32xbf16> to vector<32x32xbf16>
    %cst_20 = arith.constant dense<0.000000e+00> : vector<8x32xf32>
    %36 = tpu.matmul %33, %35, %cst_20 {dimension_numbers = #tpu.dot_dimension_numbers<[1], [0], [0], [1], [0, 0, 1, 1], [], []>} : vector<8x32xbf16>, vector<32x32xbf16>, vector<8x32xf32> -> vector<8x32xf32>
    %c0_21 = arith.constant 0 : index
    %c0_22 = arith.constant 0 : index
    %c0_23 = arith.constant 0 : index
    %37 = vector.load %arg7[%c0_21, %c0_22, %c0_23] : memref<2x1x32xf32, #tpu.memory_space<vmem>>, vector<1x1x32xf32>
    %38 = vector.shape_cast %37 : vector<1x1x32xf32> to vector<1x32xf32>
    %39 = vector.broadcast %38 : vector<1x32xf32> to vector<8x32xf32>
    %40 = arith.addf %36, %39 : vector<8x32xf32>
    %c0_24 = arith.constant 0 : index
    %c0_25 = arith.constant 0 : index
    %c0_26 = arith.constant 0 : index
    %41 = vector.load %arg5[%c0_24, %c0_25, %c0_26] : memref<2x32x32xbf16, #tpu.memory_space<vmem>>, vector<1x32x32xbf16>
    %42 = vector.shape_cast %41 : vector<1x32x32xbf16> to vector<32x32xbf16>
    %cst_27 = arith.constant dense<0.000000e+00> : vector<8x32xf32>
    %43 = tpu.matmul %33, %42, %cst_27 {dimension_numbers = #tpu.dot_dimension_numbers<[1], [0], [0], [1], [0, 0, 1, 1], [], []>} : vector<8x32xbf16>, vector<32x32xbf16>, vector<8x32xf32> -> vector<8x32xf32>
    %c0_28 = arith.constant 0 : index
    %c0_29 = arith.constant 0 : index
    %c0_30 = arith.constant 0 : index
    %44 = vector.load %arg8[%c0_28, %c0_29, %c0_30] : memref<2x1x32xf32, #tpu.memory_space<vmem>>, vector<1x1x32xf32>
    %45 = vector.shape_cast %44 : vector<1x1x32xf32> to vector<1x32xf32>
    %46 = vector.broadcast %45 : vector<1x32xf32> to vector<8x32xf32>
    %47 = arith.addf %43, %46 : vector<8x32xf32>
    %c0_31 = arith.constant 0 : index
    %c0_32 = arith.constant 0 : index
    %c0_33 = arith.constant 0 : index
    %48 = vector.load %arg6[%c0_31, %c0_32, %c0_33] : memref<2x32x32xbf16, #tpu.memory_space<vmem>>, vector<1x32x32xbf16>
    %49 = vector.shape_cast %48 : vector<1x32x32xbf16> to vector<32x32xbf16>
    %cst_34 = arith.constant dense<0.000000e+00> : vector<8x32xf32>
    %50 = tpu.matmul %33, %49, %cst_34 {dimension_numbers = #tpu.dot_dimension_numbers<[1], [0], [0], [1], [0, 0, 1, 1], [], []>} : vector<8x32xbf16>, vector<32x32xbf16>, vector<8x32xf32> -> vector<8x32xf32>
    %c0_35 = arith.constant 0 : index
    %c0_36 = arith.constant 0 : index
    %c0_37 = arith.constant 0 : index
    %51 = vector.load %arg9[%c0_35, %c0_36, %c0_37] : memref<2x1x32xf32, #tpu.memory_space<vmem>>, vector<1x1x32xf32>
    %52 = vector.shape_cast %51 : vector<1x1x32xf32> to vector<1x32xf32>
    %53 = vector.broadcast %52 : vector<1x32xf32> to vector<8x32xf32>
    %54 = arith.addf %50, %53 : vector<8x32xf32>
    %55 = vector.extract_strided_slice %40 {offsets = [0, 0], sizes = [8, 8], strides = [1, 1]} : vector<8x32xf32> to vector<8x8xf32>
    %cst_38 = arith.constant 0.353553385 : f32
    %56 = vector.broadcast %cst_38 : f32 to vector<8x8xf32>
    %57 = arith.mulf %55, %56 : vector<8x8xf32>
    %58 = vector.extract_strided_slice %47 {offsets = [0, 0], sizes = [8, 8], strides = [1, 1]} : vector<8x32xf32> to vector<8x8xf32>
    %59 = vector.extract_strided_slice %54 {offsets = [0, 0], sizes = [8, 8], strides = [1, 1]} : vector<8x32xf32> to vector<8x8xf32>
    %60 = tpu.transpose %58, [1, 0] : vector<8x8xf32> -> vector<8x8xf32>
    %cst_39 = arith.constant dense<0.000000e+00> : vector<8x8xf32>
    %61 = tpu.matmul %57, %60, %cst_39 {dimension_numbers = #tpu.dot_dimension_numbers<[1], [0], [0], [1], [0, 0, 1, 1], [], []>} : vector<8x8xf32>, vector<8x8xf32>, vector<8x8xf32> -> vector<8x8xf32>
    %cst_40 = arith.constant dense<0xFF800000> : vector<8xf32>
    %62 = vector.multi_reduction <maximumf>, %61, %cst_40 [1] : vector<8x8xf32> to vector<8xf32>
    %63 = vector.shape_cast %62 : vector<8xf32> to vector<8x1xf32>
    %64 = vector.broadcast %63 : vector<8x1xf32> to vector<8x8xf32>
    %65 = arith.subf %61, %64 : vector<8x8xf32>
    %66 = math.exp %65 : vector<8x8xf32>
    %cst_41 = arith.constant dense<0.000000e+00> : vector<8xf32>
    %67 = vector.multi_reduction <add>, %66, %cst_41 [1] : vector<8x8xf32> to vector<8xf32>
    %68 = vector.shape_cast %67 : vector<8xf32> to vector<8x1xf32>
    %69 = tpu.reciprocal %68 {approx = true} : vector<8x1xf32> -> vector<8x1xf32>
    %70 = vector.broadcast %69 : vector<8x1xf32> to vector<8x8xf32>
    %71 = arith.mulf %66, %70 : vector<8x8xf32>
    %cst_42 = arith.constant dense<0.000000e+00> : vector<8x8xf32>
    %72 = tpu.matmul %71, %59, %cst_42 {dimension_numbers = #tpu.dot_dimension_numbers<[1], [0], [0], [1], [0, 0, 1, 1], [], []>} : vector<8x8xf32>, vector<8x8xf32>, vector<8x8xf32> -> vector<8x8xf32>
    %73 = vector.extract_strided_slice %40 {offsets = [0, 8], sizes = [8, 8], strides = [1, 1]} : vector<8x32xf32> to vector<8x8xf32>
    %cst_43 = arith.constant 0.353553385 : f32
    %74 = vector.broadcast %cst_43 : f32 to vector<8x8xf32>
    %75 = arith.mulf %73, %74 : vector<8x8xf32>
    %76 = vector.extract_strided_slice %47 {offsets = [0, 8], sizes = [8, 8], strides = [1, 1]} : vector<8x32xf32> to vector<8x8xf32>
    %77 = vector.extract_strided_slice %54 {offsets = [0, 8], sizes = [8, 8], strides = [1, 1]} : vector<8x32xf32> to vector<8x8xf32>
    %78 = tpu.transpose %76, [1, 0] : vector<8x8xf32> -> vector<8x8xf32>
    %cst_44 = arith.constant dense<0.000000e+00> : vector<8x8xf32>
    %79 = tpu.matmul %75, %78, %cst_44 {dimension_numbers = #tpu.dot_dimension_numbers<[1], [0], [0], [1], [0, 0, 1, 1], [], []>} : vector<8x8xf32>, vector<8x8xf32>, vector<8x8xf32> -> vector<8x8xf32>
    %cst_45 = arith.constant dense<0xFF800000> : vector<8xf32>
    %80 = vector.multi_reduction <maximumf>, %79, %cst_45 [1] : vector<8x8xf32> to vector<8xf32>
    %81 = vector.shape_cast %80 : vector<8xf32> to vector<8x1xf32>
    %82 = vector.broadcast %81 : vector<8x1xf32> to vector<8x8xf32>
    %83 = arith.subf %79, %82 : vector<8x8xf32>
    %84 = math.exp %83 : vector<8x8xf32>
    %cst_46 = arith.constant dense<0.000000e+00> : vector<8xf32>
    %85 = vector.multi_reduction <add>, %84, %cst_46 [1] : vector<8x8xf32> to vector<8xf32>
    %86 = vector.shape_cast %85 : vector<8xf32> to vector<8x1xf32>
    %87 = tpu.reciprocal %86 {approx = true} : vector<8x1xf32> -> vector<8x1xf32>
    %88 = vector.broadcast %87 : vector<8x1xf32> to vector<8x8xf32>
    %89 = arith.mulf %84, %88 : vector<8x8xf32>
    %cst_47 = arith.constant dense<0.000000e+00> : vector<8x8xf32>
    %90 = tpu.matmul %89, %77, %cst_47 {dimension_numbers = #tpu.dot_dimension_numbers<[1], [0], [0], [1], [0, 0, 1, 1], [], []>} : vector<8x8xf32>, vector<8x8xf32>, vector<8x8xf32> -> vector<8x8xf32>
    %91 = vector.extract_strided_slice %40 {offsets = [0, 16], sizes = [8, 8], strides = [1, 1]} : vector<8x32xf32> to vector<8x8xf32>
    %cst_48 = arith.constant 0.353553385 : f32
    %92 = vector.broadcast %cst_48 : f32 to vector<8x8xf32>
    %93 = arith.mulf %91, %92 : vector<8x8xf32>
    %94 = vector.extract_strided_slice %47 {offsets = [0, 16], sizes = [8, 8], strides = [1, 1]} : vector<8x32xf32> to vector<8x8xf32>
    %95 = vector.extract_strided_slice %54 {offsets = [0, 16], sizes = [8, 8], strides = [1, 1]} : vector<8x32xf32> to vector<8x8xf32>
    %96 = tpu.transpose %94, [1, 0] : vector<8x8xf32> -> vector<8x8xf32>
    %cst_49 = arith.constant dense<0.000000e+00> : vector<8x8xf32>
    %97 = tpu.matmul %93, %96, %cst_49 {dimension_numbers = #tpu.dot_dimension_numbers<[1], [0], [0], [1], [0, 0, 1, 1], [], []>} : vector<8x8xf32>, vector<8x8xf32>, vector<8x8xf32> -> vector<8x8xf32>
    %cst_50 = arith.constant dense<0xFF800000> : vector<8xf32>
    %98 = vector.multi_reduction <maximumf>, %97, %cst_50 [1] : vector<8x8xf32> to vector<8xf32>
    %99 = vector.shape_cast %98 : vector<8xf32> to vector<8x1xf32>
    %100 = vector.broadcast %99 : vector<8x1xf32> to vector<8x8xf32>
    %101 = arith.subf %97, %100 : vector<8x8xf32>
    %102 = math.exp %101 : vector<8x8xf32>
    %cst_51 = arith.constant dense<0.000000e+00> : vector<8xf32>
    %103 = vector.multi_reduction <add>, %102, %cst_51 [1] : vector<8x8xf32> to vector<8xf32>
    %104 = vector.shape_cast %103 : vector<8xf32> to vector<8x1xf32>
    %105 = tpu.reciprocal %104 {approx = true} : vector<8x1xf32> -> vector<8x1xf32>
    %106 = vector.broadcast %105 : vector<8x1xf32> to vector<8x8xf32>
    %107 = arith.mulf %102, %106 : vector<8x8xf32>
    %cst_52 = arith.constant dense<0.000000e+00> : vector<8x8xf32>
    %108 = tpu.matmul %107, %95, %cst_52 {dimension_numbers = #tpu.dot_dimension_numbers<[1], [0], [0], [1], [0, 0, 1, 1], [], []>} : vector<8x8xf32>, vector<8x8xf32>, vector<8x8xf32> -> vector<8x8xf32>
    %109 = vector.extract_strided_slice %40 {offsets = [0, 24], sizes = [8, 8], strides = [1, 1]} : vector<8x32xf32> to vector<8x8xf32>
    %cst_53 = arith.constant 0.353553385 : f32
    %110 = vector.broadcast %cst_53 : f32 to vector<8x8xf32>
    %111 = arith.mulf %109, %110 : vector<8x8xf32>
    %112 = vector.extract_strided_slice %47 {offsets = [0, 24], sizes = [8, 8], strides = [1, 1]} : vector<8x32xf32> to vector<8x8xf32>
    %113 = vector.extract_strided_slice %54 {offsets = [0, 24], sizes = [8, 8], strides = [1, 1]} : vector<8x32xf32> to vector<8x8xf32>
    %114 = tpu.transpose %112, [1, 0] : vector<8x8xf32> -> vector<8x8xf32>
    %cst_54 = arith.constant dense<0.000000e+00> : vector<8x8xf32>
    %115 = tpu.matmul %111, %114, %cst_54 {dimension_numbers = #tpu.dot_dimension_numbers<[1], [0], [0], [1], [0, 0, 1, 1], [], []>} : vector<8x8xf32>, vector<8x8xf32>, vector<8x8xf32> -> vector<8x8xf32>
    %cst_55 = arith.constant dense<0xFF800000> : vector<8xf32>
    %116 = vector.multi_reduction <maximumf>, %115, %cst_55 [1] : vector<8x8xf32> to vector<8xf32>
    %117 = vector.shape_cast %116 : vector<8xf32> to vector<8x1xf32>
    %118 = vector.broadcast %117 : vector<8x1xf32> to vector<8x8xf32>
    %119 = arith.subf %115, %118 : vector<8x8xf32>
    %120 = math.exp %119 : vector<8x8xf32>
    %cst_56 = arith.constant dense<0.000000e+00> : vector<8xf32>
    %121 = vector.multi_reduction <add>, %120, %cst_56 [1] : vector<8x8xf32> to vector<8xf32>
    %122 = vector.shape_cast %121 : vector<8xf32> to vector<8x1xf32>
    %123 = tpu.reciprocal %122 {approx = true} : vector<8x1xf32> -> vector<8x1xf32>
    %124 = vector.broadcast %123 : vector<8x1xf32> to vector<8x8xf32>
    %125 = arith.mulf %120, %124 : vector<8x8xf32>
    %cst_57 = arith.constant dense<0.000000e+00> : vector<8x8xf32>
    %126 = tpu.matmul %125, %113, %cst_57 {dimension_numbers = #tpu.dot_dimension_numbers<[1], [0], [0], [1], [0, 0, 1, 1], [], []>} : vector<8x8xf32>, vector<8x8xf32>, vector<8x8xf32> -> vector<8x8xf32>
    %127 = tpu.concatenate %72, %90, %108, %126 in 1 : vector<8x8xf32>, vector<8x8xf32>, vector<8x8xf32>, vector<8x8xf32> -> vector<8x32xf32>
    %128 = arith.truncf %127 : vector<8x32xf32> to vector<8x32xbf16>
    %c0_58 = arith.constant 0 : index
    %c0_59 = arith.constant 0 : index
    %c0_60 = arith.constant 0 : index
    %129 = vector.load %arg10[%c0_58, %c0_59, %c0_60] : memref<2x32x32xbf16, #tpu.memory_space<vmem>>, vector<1x32x32xbf16>
    %130 = vector.shape_cast %129 : vector<1x32x32xbf16> to vector<32x32xbf16>
    %cst_61 = arith.constant dense<0.000000e+00> : vector<8x32xf32>
    %131 = tpu.matmul %128, %130, %cst_61 {dimension_numbers = #tpu.dot_dimension_numbers<[1], [0], [0], [1], [0, 0, 1, 1], [], []>} : vector<8x32xbf16>, vector<32x32xbf16>, vector<8x32xf32> -> vector<8x32xf32>
    %c0_62 = arith.constant 0 : index
    %c0_63 = arith.constant 0 : index
    %c0_64 = arith.constant 0 : index
    %132 = vector.load %arg11[%c0_62, %c0_63, %c0_64] : memref<2x1x32xf32, #tpu.memory_space<vmem>>, vector<1x1x32xf32>
    %133 = vector.shape_cast %132 : vector<1x1x32xf32> to vector<1x32xf32>
    %134 = vector.broadcast %133 : vector<1x32xf32> to vector<8x32xf32>
    %135 = arith.addf %131, %134 : vector<8x32xf32>
    %136 = arith.addf %6, %135 : vector<8x32xf32>
    %c0_65 = arith.constant 0 : index
    %c0_66 = arith.constant 0 : index
    %c0_67 = arith.constant 0 : index
    %137 = vector.load %arg14[%c0_65, %c0_66, %c0_67] : memref<2x1x32xf32, #tpu.memory_space<vmem>>, vector<1x1x32xf32>
    %138 = vector.shape_cast %137 : vector<1x1x32xf32> to vector<1x32xf32>
    %c0_68 = arith.constant 0 : index
    %c0_69 = arith.constant 0 : index
    %c0_70 = arith.constant 0 : index
    %139 = vector.load %arg15[%c0_68, %c0_69, %c0_70] : memref<2x1x32xf32, #tpu.memory_space<vmem>>, vector<1x1x32xf32>
    %140 = vector.shape_cast %139 : vector<1x1x32xf32> to vector<1x32xf32>
    %cst_71 = arith.constant dense<0.000000e+00> : vector<8xf32>
    %141 = vector.multi_reduction <add>, %136, %cst_71 [1] : vector<8x32xf32> to vector<8xf32>
    %142 = vector.shape_cast %141 : vector<8xf32> to vector<8x1xf32>
    %cst_72 = arith.constant 3.200000e+01 : f32
    %143 = vector.broadcast %cst_72 : f32 to vector<8x1xf32>
    %144 = arith.divf %142, %143 : vector<8x1xf32>
    %145 = vector.broadcast %144 : vector<8x1xf32> to vector<8x32xf32>
    %146 = arith.subf %136, %145 : vector<8x32xf32>
    %147 = arith.mulf %146, %146 : vector<8x32xf32>
    %cst_73 = arith.constant dense<0.000000e+00> : vector<8xf32>
    %148 = vector.multi_reduction <add>, %147, %cst_73 [1] : vector<8x32xf32> to vector<8xf32>
    %149 = vector.shape_cast %148 : vector<8xf32> to vector<8x1xf32>
    %cst_74 = arith.constant 3.200000e+01 : f32
    %150 = vector.broadcast %cst_74 : f32 to vector<8x1xf32>
    %151 = arith.divf %149, %150 : vector<8x1xf32>
    %152 = vector.broadcast %144 : vector<8x1xf32> to vector<8x32xf32>
    %153 = arith.subf %136, %152 : vector<8x32xf32>
    %cst_75 = arith.constant 9.99999974E-6 : f32
    %154 = vector.broadcast %cst_75 : f32 to vector<8x1xf32>
    %155 = arith.addf %151, %154 : vector<8x1xf32>
    %156 = math.rsqrt %155 : vector<8x1xf32>
    %157 = vector.broadcast %156 : vector<8x1xf32> to vector<8x32xf32>
    %158 = arith.mulf %153, %157 : vector<8x32xf32>
    %159 = vector.broadcast %138 : vector<1x32xf32> to vector<8x32xf32>
    %160 = arith.mulf %158, %159 : vector<8x32xf32>
    %161 = vector.broadcast %140 : vector<1x32xf32> to vector<8x32xf32>
    %162 = arith.addf %160, %161 : vector<8x32xf32>
    %163 = arith.truncf %162 : vector<8x32xf32> to vector<8x32xbf16>
    %c0_76 = arith.constant 0 : index
    %c0_77 = arith.constant 0 : index
    %c0_78 = arith.constant 0 : index
    %164 = vector.load %arg16[%c0_76, %c0_77, %c0_78] : memref<2x32x32xbf16, #tpu.memory_space<vmem>>, vector<1x32x32xbf16>
    %165 = vector.shape_cast %164 : vector<1x32x32xbf16> to vector<32x32xbf16>
    %cst_79 = arith.constant dense<0.000000e+00> : vector<8x32xf32>
    %166 = tpu.matmul %163, %165, %cst_79 {dimension_numbers = #tpu.dot_dimension_numbers<[1], [0], [0], [1], [0, 0, 1, 1], [], []>} : vector<8x32xbf16>, vector<32x32xbf16>, vector<8x32xf32> -> vector<8x32xf32>
    %c0_80 = arith.constant 0 : index
    %c0_81 = arith.constant 0 : index
    %c0_82 = arith.constant 0 : index
    %167 = vector.load %arg17[%c0_80, %c0_81, %c0_82] : memref<2x1x32xf32, #tpu.memory_space<vmem>>, vector<1x1x32xf32>
    %168 = vector.shape_cast %167 : vector<1x1x32xf32> to vector<1x32xf32>
    %169 = vector.broadcast %168 : vector<1x32xf32> to vector<8x32xf32>
    %170 = arith.addf %166, %169 : vector<8x32xf32>
    %cst_83 = arith.constant 5.000000e-01 : f32
    %171 = vector.broadcast %cst_83 : f32 to vector<8x32xf32>
    %172 = arith.mulf %171, %170 : vector<8x32xf32>
    %cst_84 = arith.constant 0.707106769 : f32
    %173 = vector.broadcast %cst_84 : f32 to vector<8x32xf32>
    %174 = arith.mulf %170, %173 : vector<8x32xf32>
    %175 = math.erf %174 : vector<8x32xf32>
    %cst_85 = arith.constant 1.000000e+00 : f32
    %176 = vector.broadcast %cst_85 : f32 to vector<8x32xf32>
    %177 = arith.addf %176, %175 : vector<8x32xf32>
    %178 = arith.mulf %172, %177 : vector<8x32xf32>
    %179 = arith.truncf %178 : vector<8x32xf32> to vector<8x32xbf16>
    %c0_86 = arith.constant 0 : index
    %c0_87 = arith.constant 0 : index
    %c0_88 = arith.constant 0 : index
    %180 = vector.load %arg18[%c0_86, %c0_87, %c0_88] : memref<2x32x32xbf16, #tpu.memory_space<vmem>>, vector<1x32x32xbf16>
    %181 = vector.shape_cast %180 : vector<1x32x32xbf16> to vector<32x32xbf16>
    %cst_89 = arith.constant dense<0.000000e+00> : vector<8x32xf32>
    %182 = tpu.matmul %179, %181, %cst_89 {dimension_numbers = #tpu.dot_dimension_numbers<[1], [0], [0], [1], [0, 0, 1, 1], [], []>} : vector<8x32xbf16>, vector<32x32xbf16>, vector<8x32xf32> -> vector<8x32xf32>
    %c0_90 = arith.constant 0 : index
    %c0_91 = arith.constant 0 : index
    %c0_92 = arith.constant 0 : index
    %183 = vector.load %arg19[%c0_90, %c0_91, %c0_92] : memref<2x1x32xf32, #tpu.memory_space<vmem>>, vector<1x1x32xf32>
    %184 = vector.shape_cast %183 : vector<1x1x32xf32> to vector<1x32xf32>
    %185 = vector.broadcast %184 : vector<1x32xf32> to vector<8x32xf32>
    %186 = arith.addf %182, %185 : vector<8x32xf32>
    %187 = arith.addf %136, %186 : vector<8x32xf32>
    %c1 = arith.constant 1 : index
    %c0_93 = arith.constant 0 : index
    %c0_94 = arith.constant 0 : index
    %188 = vector.load %arg12[%c1, %c0_93, %c0_94] : memref<2x1x32xf32, #tpu.memory_space<vmem>>, vector<1x1x32xf32>
    %189 = vector.shape_cast %188 : vector<1x1x32xf32> to vector<1x32xf32>
    %c1_95 = arith.constant 1 : index
    %c0_96 = arith.constant 0 : index
    %c0_97 = arith.constant 0 : index
    %190 = vector.load %arg13[%c1_95, %c0_96, %c0_97] : memref<2x1x32xf32, #tpu.memory_space<vmem>>, vector<1x1x32xf32>
    %191 = vector.shape_cast %190 : vector<1x1x32xf32> to vector<1x32xf32>
    %cst_98 = arith.constant dense<0.000000e+00> : vector<8xf32>
    %192 = vector.multi_reduction <add>, %187, %cst_98 [1] : vector<8x32xf32> to vector<8xf32>
    %193 = vector.shape_cast %192 : vector<8xf32> to vector<8x1xf32>
    %cst_99 = arith.constant 3.200000e+01 : f32
    %194 = vector.broadcast %cst_99 : f32 to vector<8x1xf32>
    %195 = arith.divf %193, %194 : vector<8x1xf32>
    %196 = vector.broadcast %195 : vector<8x1xf32> to vector<8x32xf32>
    %197 = arith.subf %187, %196 : vector<8x32xf32>
    %198 = arith.mulf %197, %197 : vector<8x32xf32>
    %cst_100 = arith.constant dense<0.000000e+00> : vector<8xf32>
    %199 = vector.multi_reduction <add>, %198, %cst_100 [1] : vector<8x32xf32> to vector<8xf32>
    %200 = vector.shape_cast %199 : vector<8xf32> to vector<8x1xf32>
    %cst_101 = arith.constant 3.200000e+01 : f32
    %201 = vector.broadcast %cst_101 : f32 to vector<8x1xf32>
    %202 = arith.divf %200, %201 : vector<8x1xf32>
    %203 = vector.broadcast %195 : vector<8x1xf32> to vector<8x32xf32>
    %204 = arith.subf %187, %203 : vector<8x32xf32>
    %cst_102 = arith.constant 9.99999974E-6 : f32
    %205 = vector.broadcast %cst_102 : f32 to vector<8x1xf32>
    %206 = arith.addf %202, %205 : vector<8x1xf32>
    %207 = math.rsqrt %206 : vector<8x1xf32>
    %208 = vector.broadcast %207 : vector<8x1xf32> to vector<8x32xf32>
    %209 = arith.mulf %204, %208 : vector<8x32xf32>
    %210 = vector.broadcast %189 : vector<1x32xf32> to vector<8x32xf32>
    %211 = arith.mulf %209, %210 : vector<8x32xf32>
    %212 = vector.broadcast %191 : vector<1x32xf32> to vector<8x32xf32>
    %213 = arith.addf %211, %212 : vector<8x32xf32>
    %214 = arith.truncf %213 : vector<8x32xf32> to vector<8x32xbf16>
    %c1_103 = arith.constant 1 : index
    %c0_104 = arith.constant 0 : index
    %c0_105 = arith.constant 0 : index
    %215 = vector.load %arg4[%c1_103, %c0_104, %c0_105] : memref<2x32x32xbf16, #tpu.memory_space<vmem>>, vector<1x32x32xbf16>
    %216 = vector.shape_cast %215 : vector<1x32x32xbf16> to vector<32x32xbf16>
    %cst_106 = arith.constant dense<0.000000e+00> : vector<8x32xf32>
    %217 = tpu.matmul %214, %216, %cst_106 {dimension_numbers = #tpu.dot_dimension_numbers<[1], [0], [0], [1], [0, 0, 1, 1], [], []>} : vector<8x32xbf16>, vector<32x32xbf16>, vector<8x32xf32> -> vector<8x32xf32>
    %c1_107 = arith.constant 1 : index
    %c0_108 = arith.constant 0 : index
    %c0_109 = arith.constant 0 : index
    %218 = vector.load %arg7[%c1_107, %c0_108, %c0_109] : memref<2x1x32xf32, #tpu.memory_space<vmem>>, vector<1x1x32xf32>
    %219 = vector.shape_cast %218 : vector<1x1x32xf32> to vector<1x32xf32>
    %220 = vector.broadcast %219 : vector<1x32xf32> to vector<8x32xf32>
    %221 = arith.addf %217, %220 : vector<8x32xf32>
    %c1_110 = arith.constant 1 : index
    %c0_111 = arith.constant 0 : index
    %c0_112 = arith.constant 0 : index
    %222 = vector.load %arg5[%c1_110, %c0_111, %c0_112] : memref<2x32x32xbf16, #tpu.memory_space<vmem>>, vector<1x32x32xbf16>
    %223 = vector.shape_cast %222 : vector<1x32x32xbf16> to vector<32x32xbf16>
    %cst_113 = arith.constant dense<0.000000e+00> : vector<8x32xf32>
    %224 = tpu.matmul %214, %223, %cst_113 {dimension_numbers = #tpu.dot_dimension_numbers<[1], [0], [0], [1], [0, 0, 1, 1], [], []>} : vector<8x32xbf16>, vector<32x32xbf16>, vector<8x32xf32> -> vector<8x32xf32>
    %c1_114 = arith.constant 1 : index
    %c0_115 = arith.constant 0 : index
    %c0_116 = arith.constant 0 : index
    %225 = vector.load %arg8[%c1_114, %c0_115, %c0_116] : memref<2x1x32xf32, #tpu.memory_space<vmem>>, vector<1x1x32xf32>
    %226 = vector.shape_cast %225 : vector<1x1x32xf32> to vector<1x32xf32>
    %227 = vector.broadcast %226 : vector<1x32xf32> to vector<8x32xf32>
    %228 = arith.addf %224, %227 : vector<8x32xf32>
    %c1_117 = arith.constant 1 : index
    %c0_118 = arith.constant 0 : index
    %c0_119 = arith.constant 0 : index
    %229 = vector.load %arg6[%c1_117, %c0_118, %c0_119] : memref<2x32x32xbf16, #tpu.memory_space<vmem>>, vector<1x32x32xbf16>
    %230 = vector.shape_cast %229 : vector<1x32x32xbf16> to vector<32x32xbf16>
    %cst_120 = arith.constant dense<0.000000e+00> : vector<8x32xf32>
    %231 = tpu.matmul %214, %230, %cst_120 {dimension_numbers = #tpu.dot_dimension_numbers<[1], [0], [0], [1], [0, 0, 1, 1], [], []>} : vector<8x32xbf16>, vector<32x32xbf16>, vector<8x32xf32> -> vector<8x32xf32>
    %c1_121 = arith.constant 1 : index
    %c0_122 = arith.constant 0 : index
    %c0_123 = arith.constant 0 : index
    %232 = vector.load %arg9[%c1_121, %c0_122, %c0_123] : memref<2x1x32xf32, #tpu.memory_space<vmem>>, vector<1x1x32xf32>
    %233 = vector.shape_cast %232 : vector<1x1x32xf32> to vector<1x32xf32>
    %234 = vector.broadcast %233 : vector<1x32xf32> to vector<8x32xf32>
    %235 = arith.addf %231, %234 : vector<8x32xf32>
    %236 = vector.extract_strided_slice %221 {offsets = [0, 0], sizes = [8, 8], strides = [1, 1]} : vector<8x32xf32> to vector<8x8xf32>
    %cst_124 = arith.constant 0.353553385 : f32
    %237 = vector.broadcast %cst_124 : f32 to vector<8x8xf32>
    %238 = arith.mulf %236, %237 : vector<8x8xf32>
    %239 = vector.extract_strided_slice %228 {offsets = [0, 0], sizes = [8, 8], strides = [1, 1]} : vector<8x32xf32> to vector<8x8xf32>
    %240 = vector.extract_strided_slice %235 {offsets = [0, 0], sizes = [8, 8], strides = [1, 1]} : vector<8x32xf32> to vector<8x8xf32>
    %241 = tpu.transpose %239, [1, 0] : vector<8x8xf32> -> vector<8x8xf32>
    %cst_125 = arith.constant dense<0.000000e+00> : vector<8x8xf32>
    %242 = tpu.matmul %238, %241, %cst_125 {dimension_numbers = #tpu.dot_dimension_numbers<[1], [0], [0], [1], [0, 0, 1, 1], [], []>} : vector<8x8xf32>, vector<8x8xf32>, vector<8x8xf32> -> vector<8x8xf32>
    %cst_126 = arith.constant dense<0xFF800000> : vector<8xf32>
    %243 = vector.multi_reduction <maximumf>, %242, %cst_126 [1] : vector<8x8xf32> to vector<8xf32>
    %244 = vector.shape_cast %243 : vector<8xf32> to vector<8x1xf32>
    %245 = vector.broadcast %244 : vector<8x1xf32> to vector<8x8xf32>
    %246 = arith.subf %242, %245 : vector<8x8xf32>
    %247 = math.exp %246 : vector<8x8xf32>
    %cst_127 = arith.constant dense<0.000000e+00> : vector<8xf32>
    %248 = vector.multi_reduction <add>, %247, %cst_127 [1] : vector<8x8xf32> to vector<8xf32>
    %249 = vector.shape_cast %248 : vector<8xf32> to vector<8x1xf32>
    %250 = tpu.reciprocal %249 {approx = true} : vector<8x1xf32> -> vector<8x1xf32>
    %251 = vector.broadcast %250 : vector<8x1xf32> to vector<8x8xf32>
    %252 = arith.mulf %247, %251 : vector<8x8xf32>
    %cst_128 = arith.constant dense<0.000000e+00> : vector<8x8xf32>
    %253 = tpu.matmul %252, %240, %cst_128 {dimension_numbers = #tpu.dot_dimension_numbers<[1], [0], [0], [1], [0, 0, 1, 1], [], []>} : vector<8x8xf32>, vector<8x8xf32>, vector<8x8xf32> -> vector<8x8xf32>
    %254 = vector.extract_strided_slice %221 {offsets = [0, 8], sizes = [8, 8], strides = [1, 1]} : vector<8x32xf32> to vector<8x8xf32>
    %cst_129 = arith.constant 0.353553385 : f32
    %255 = vector.broadcast %cst_129 : f32 to vector<8x8xf32>
    %256 = arith.mulf %254, %255 : vector<8x8xf32>
    %257 = vector.extract_strided_slice %228 {offsets = [0, 8], sizes = [8, 8], strides = [1, 1]} : vector<8x32xf32> to vector<8x8xf32>
    %258 = vector.extract_strided_slice %235 {offsets = [0, 8], sizes = [8, 8], strides = [1, 1]} : vector<8x32xf32> to vector<8x8xf32>
    %259 = tpu.transpose %257, [1, 0] : vector<8x8xf32> -> vector<8x8xf32>
    %cst_130 = arith.constant dense<0.000000e+00> : vector<8x8xf32>
    %260 = tpu.matmul %256, %259, %cst_130 {dimension_numbers = #tpu.dot_dimension_numbers<[1], [0], [0], [1], [0, 0, 1, 1], [], []>} : vector<8x8xf32>, vector<8x8xf32>, vector<8x8xf32> -> vector<8x8xf32>
    %cst_131 = arith.constant dense<0xFF800000> : vector<8xf32>
    %261 = vector.multi_reduction <maximumf>, %260, %cst_131 [1] : vector<8x8xf32> to vector<8xf32>
    %262 = vector.shape_cast %261 : vector<8xf32> to vector<8x1xf32>
    %263 = vector.broadcast %262 : vector<8x1xf32> to vector<8x8xf32>
    %264 = arith.subf %260, %263 : vector<8x8xf32>
    %265 = math.exp %264 : vector<8x8xf32>
    %cst_132 = arith.constant dense<0.000000e+00> : vector<8xf32>
    %266 = vector.multi_reduction <add>, %265, %cst_132 [1] : vector<8x8xf32> to vector<8xf32>
    %267 = vector.shape_cast %266 : vector<8xf32> to vector<8x1xf32>
    %268 = tpu.reciprocal %267 {approx = true} : vector<8x1xf32> -> vector<8x1xf32>
    %269 = vector.broadcast %268 : vector<8x1xf32> to vector<8x8xf32>
    %270 = arith.mulf %265, %269 : vector<8x8xf32>
    %cst_133 = arith.constant dense<0.000000e+00> : vector<8x8xf32>
    %271 = tpu.matmul %270, %258, %cst_133 {dimension_numbers = #tpu.dot_dimension_numbers<[1], [0], [0], [1], [0, 0, 1, 1], [], []>} : vector<8x8xf32>, vector<8x8xf32>, vector<8x8xf32> -> vector<8x8xf32>
    %272 = vector.extract_strided_slice %221 {offsets = [0, 16], sizes = [8, 8], strides = [1, 1]} : vector<8x32xf32> to vector<8x8xf32>
    %cst_134 = arith.constant 0.353553385 : f32
    %273 = vector.broadcast %cst_134 : f32 to vector<8x8xf32>
    %274 = arith.mulf %272, %273 : vector<8x8xf32>
    %275 = vector.extract_strided_slice %228 {offsets = [0, 16], sizes = [8, 8], strides = [1, 1]} : vector<8x32xf32> to vector<8x8xf32>
    %276 = vector.extract_strided_slice %235 {offsets = [0, 16], sizes = [8, 8], strides = [1, 1]} : vector<8x32xf32> to vector<8x8xf32>
    %277 = tpu.transpose %275, [1, 0] : vector<8x8xf32> -> vector<8x8xf32>
    %cst_135 = arith.constant dense<0.000000e+00> : vector<8x8xf32>
    %278 = tpu.matmul %274, %277, %cst_135 {dimension_numbers = #tpu.dot_dimension_numbers<[1], [0], [0], [1], [0, 0, 1, 1], [], []>} : vector<8x8xf32>, vector<8x8xf32>, vector<8x8xf32> -> vector<8x8xf32>
    %cst_136 = arith.constant dense<0xFF800000> : vector<8xf32>
    %279 = vector.multi_reduction <maximumf>, %278, %cst_136 [1] : vector<8x8xf32> to vector<8xf32>
    %280 = vector.shape_cast %279 : vector<8xf32> to vector<8x1xf32>
    %281 = vector.broadcast %280 : vector<8x1xf32> to vector<8x8xf32>
    %282 = arith.subf %278, %281 : vector<8x8xf32>
    %283 = math.exp %282 : vector<8x8xf32>
    %cst_137 = arith.constant dense<0.000000e+00> : vector<8xf32>
    %284 = vector.multi_reduction <add>, %283, %cst_137 [1] : vector<8x8xf32> to vector<8xf32>
    %285 = vector.shape_cast %284 : vector<8xf32> to vector<8x1xf32>
    %286 = tpu.reciprocal %285 {approx = true} : vector<8x1xf32> -> vector<8x1xf32>
    %287 = vector.broadcast %286 : vector<8x1xf32> to vector<8x8xf32>
    %288 = arith.mulf %283, %287 : vector<8x8xf32>
    %cst_138 = arith.constant dense<0.000000e+00> : vector<8x8xf32>
    %289 = tpu.matmul %288, %276, %cst_138 {dimension_numbers = #tpu.dot_dimension_numbers<[1], [0], [0], [1], [0, 0, 1, 1], [], []>} : vector<8x8xf32>, vector<8x8xf32>, vector<8x8xf32> -> vector<8x8xf32>
    %290 = vector.extract_strided_slice %221 {offsets = [0, 24], sizes = [8, 8], strides = [1, 1]} : vector<8x32xf32> to vector<8x8xf32>
    %cst_139 = arith.constant 0.353553385 : f32
    %291 = vector.broadcast %cst_139 : f32 to vector<8x8xf32>
    %292 = arith.mulf %290, %291 : vector<8x8xf32>
    %293 = vector.extract_strided_slice %228 {offsets = [0, 24], sizes = [8, 8], strides = [1, 1]} : vector<8x32xf32> to vector<8x8xf32>
    %294 = vector.extract_strided_slice %235 {offsets = [0, 24], sizes = [8, 8], strides = [1, 1]} : vector<8x32xf32> to vector<8x8xf32>
    %295 = tpu.transpose %293, [1, 0] : vector<8x8xf32> -> vector<8x8xf32>
    %cst_140 = arith.constant dense<0.000000e+00> : vector<8x8xf32>
    %296 = tpu.matmul %292, %295, %cst_140 {dimension_numbers = #tpu.dot_dimension_numbers<[1], [0], [0], [1], [0, 0, 1, 1], [], []>} : vector<8x8xf32>, vector<8x8xf32>, vector<8x8xf32> -> vector<8x8xf32>
    %cst_141 = arith.constant dense<0xFF800000> : vector<8xf32>
    %297 = vector.multi_reduction <maximumf>, %296, %cst_141 [1] : vector<8x8xf32> to vector<8xf32>
    %298 = vector.shape_cast %297 : vector<8xf32> to vector<8x1xf32>
    %299 = vector.broadcast %298 : vector<8x1xf32> to vector<8x8xf32>
    %300 = arith.subf %296, %299 : vector<8x8xf32>
    %301 = math.exp %300 : vector<8x8xf32>
    %cst_142 = arith.constant dense<0.000000e+00> : vector<8xf32>
    %302 = vector.multi_reduction <add>, %301, %cst_142 [1] : vector<8x8xf32> to vector<8xf32>
    %303 = vector.shape_cast %302 : vector<8xf32> to vector<8x1xf32>
    %304 = tpu.reciprocal %303 {approx = true} : vector<8x1xf32> -> vector<8x1xf32>
    %305 = vector.broadcast %304 : vector<8x1xf32> to vector<8x8xf32>
    %306 = arith.mulf %301, %305 : vector<8x8xf32>
    %cst_143 = arith.constant dense<0.000000e+00> : vector<8x8xf32>
    %307 = tpu.matmul %306, %294, %cst_143 {dimension_numbers = #tpu.dot_dimension_numbers<[1], [0], [0], [1], [0, 0, 1, 1], [], []>} : vector<8x8xf32>, vector<8x8xf32>, vector<8x8xf32> -> vector<8x8xf32>
    %308 = tpu.concatenate %253, %271, %289, %307 in 1 : vector<8x8xf32>, vector<8x8xf32>, vector<8x8xf32>, vector<8x8xf32> -> vector<8x32xf32>
    %309 = arith.truncf %308 : vector<8x32xf32> to vector<8x32xbf16>
    %c1_144 = arith.constant 1 : index
    %c0_145 = arith.constant 0 : index
    %c0_146 = arith.constant 0 : index
    %310 = vector.load %arg10[%c1_144, %c0_145, %c0_146] : memref<2x32x32xbf16, #tpu.memory_space<vmem>>, vector<1x32x32xbf16>
    %311 = vector.shape_cast %310 : vector<1x32x32xbf16> to vector<32x32xbf16>
    %cst_147 = arith.constant dense<0.000000e+00> : vector<8x32xf32>
    %312 = tpu.matmul %309, %311, %cst_147 {dimension_numbers = #tpu.dot_dimension_numbers<[1], [0], [0], [1], [0, 0, 1, 1], [], []>} : vector<8x32xbf16>, vector<32x32xbf16>, vector<8x32xf32> -> vector<8x32xf32>
    %c1_148 = arith.constant 1 : index
    %c0_149 = arith.constant 0 : index
    %c0_150 = arith.constant 0 : index
    %313 = vector.load %arg11[%c1_148, %c0_149, %c0_150] : memref<2x1x32xf32, #tpu.memory_space<vmem>>, vector<1x1x32xf32>
    %314 = vector.shape_cast %313 : vector<1x1x32xf32> to vector<1x32xf32>
    %315 = vector.broadcast %314 : vector<1x32xf32> to vector<8x32xf32>
    %316 = arith.addf %312, %315 : vector<8x32xf32>
    %317 = arith.addf %187, %316 : vector<8x32xf32>
    %c1_151 = arith.constant 1 : index
    %c0_152 = arith.constant 0 : index
    %c0_153 = arith.constant 0 : index
    %318 = vector.load %arg14[%c1_151, %c0_152, %c0_153] : memref<2x1x32xf32, #tpu.memory_space<vmem>>, vector<1x1x32xf32>
    %319 = vector.shape_cast %318 : vector<1x1x32xf32> to vector<1x32xf32>
    %c1_154 = arith.constant 1 : index
    %c0_155 = arith.constant 0 : index
    %c0_156 = arith.constant 0 : index
    %320 = vector.load %arg15[%c1_154, %c0_155, %c0_156] : memref<2x1x32xf32, #tpu.memory_space<vmem>>, vector<1x1x32xf32>
    %321 = vector.shape_cast %320 : vector<1x1x32xf32> to vector<1x32xf32>
    %cst_157 = arith.constant dense<0.000000e+00> : vector<8xf32>
    %322 = vector.multi_reduction <add>, %317, %cst_157 [1] : vector<8x32xf32> to vector<8xf32>
    %323 = vector.shape_cast %322 : vector<8xf32> to vector<8x1xf32>
    %cst_158 = arith.constant 3.200000e+01 : f32
    %324 = vector.broadcast %cst_158 : f32 to vector<8x1xf32>
    %325 = arith.divf %323, %324 : vector<8x1xf32>
    %326 = vector.broadcast %325 : vector<8x1xf32> to vector<8x32xf32>
    %327 = arith.subf %317, %326 : vector<8x32xf32>
    %328 = arith.mulf %327, %327 : vector<8x32xf32>
    %cst_159 = arith.constant dense<0.000000e+00> : vector<8xf32>
    %329 = vector.multi_reduction <add>, %328, %cst_159 [1] : vector<8x32xf32> to vector<8xf32>
    %330 = vector.shape_cast %329 : vector<8xf32> to vector<8x1xf32>
    %cst_160 = arith.constant 3.200000e+01 : f32
    %331 = vector.broadcast %cst_160 : f32 to vector<8x1xf32>
    %332 = arith.divf %330, %331 : vector<8x1xf32>
    %333 = vector.broadcast %325 : vector<8x1xf32> to vector<8x32xf32>
    %334 = arith.subf %317, %333 : vector<8x32xf32>
    %cst_161 = arith.constant 9.99999974E-6 : f32
    %335 = vector.broadcast %cst_161 : f32 to vector<8x1xf32>
    %336 = arith.addf %332, %335 : vector<8x1xf32>
    %337 = math.rsqrt %336 : vector<8x1xf32>
    %338 = vector.broadcast %337 : vector<8x1xf32> to vector<8x32xf32>
    %339 = arith.mulf %334, %338 : vector<8x32xf32>
    %340 = vector.broadcast %319 : vector<1x32xf32> to vector<8x32xf32>
    %341 = arith.mulf %339, %340 : vector<8x32xf32>
    %342 = vector.broadcast %321 : vector<1x32xf32> to vector<8x32xf32>
    %343 = arith.addf %341, %342 : vector<8x32xf32>
    %344 = arith.truncf %343 : vector<8x32xf32> to vector<8x32xbf16>
    %c1_162 = arith.constant 1 : index
    %c0_163 = arith.constant 0 : index
    %c0_164 = arith.constant 0 : index
    %345 = vector.load %arg16[%c1_162, %c0_163, %c0_164] : memref<2x32x32xbf16, #tpu.memory_space<vmem>>, vector<1x32x32xbf16>
    %346 = vector.shape_cast %345 : vector<1x32x32xbf16> to vector<32x32xbf16>
    %cst_165 = arith.constant dense<0.000000e+00> : vector<8x32xf32>
    %347 = tpu.matmul %344, %346, %cst_165 {dimension_numbers = #tpu.dot_dimension_numbers<[1], [0], [0], [1], [0, 0, 1, 1], [], []>} : vector<8x32xbf16>, vector<32x32xbf16>, vector<8x32xf32> -> vector<8x32xf32>
    %c1_166 = arith.constant 1 : index
    %c0_167 = arith.constant 0 : index
    %c0_168 = arith.constant 0 : index
    %348 = vector.load %arg17[%c1_166, %c0_167, %c0_168] : memref<2x1x32xf32, #tpu.memory_space<vmem>>, vector<1x1x32xf32>
    %349 = vector.shape_cast %348 : vector<1x1x32xf32> to vector<1x32xf32>
    %350 = vector.broadcast %349 : vector<1x32xf32> to vector<8x32xf32>
    %351 = arith.addf %347, %350 : vector<8x32xf32>
    %cst_169 = arith.constant 5.000000e-01 : f32
    %352 = vector.broadcast %cst_169 : f32 to vector<8x32xf32>
    %353 = arith.mulf %352, %351 : vector<8x32xf32>
    %cst_170 = arith.constant 0.707106769 : f32
    %354 = vector.broadcast %cst_170 : f32 to vector<8x32xf32>
    %355 = arith.mulf %351, %354 : vector<8x32xf32>
    %356 = math.erf %355 : vector<8x32xf32>
    %cst_171 = arith.constant 1.000000e+00 : f32
    %357 = vector.broadcast %cst_171 : f32 to vector<8x32xf32>
    %358 = arith.addf %357, %356 : vector<8x32xf32>
    %359 = arith.mulf %353, %358 : vector<8x32xf32>
    %360 = arith.truncf %359 : vector<8x32xf32> to vector<8x32xbf16>
    %c1_172 = arith.constant 1 : index
    %c0_173 = arith.constant 0 : index
    %c0_174 = arith.constant 0 : index
    %361 = vector.load %arg18[%c1_172, %c0_173, %c0_174] : memref<2x32x32xbf16, #tpu.memory_space<vmem>>, vector<1x32x32xbf16>
    %362 = vector.shape_cast %361 : vector<1x32x32xbf16> to vector<32x32xbf16>
    %cst_175 = arith.constant dense<0.000000e+00> : vector<8x32xf32>
    %363 = tpu.matmul %360, %362, %cst_175 {dimension_numbers = #tpu.dot_dimension_numbers<[1], [0], [0], [1], [0, 0, 1, 1], [], []>} : vector<8x32xbf16>, vector<32x32xbf16>, vector<8x32xf32> -> vector<8x32xf32>
    %c1_176 = arith.constant 1 : index
    %c0_177 = arith.constant 0 : index
    %c0_178 = arith.constant 0 : index
    %364 = vector.load %arg19[%c1_176, %c0_177, %c0_178] : memref<2x1x32xf32, #tpu.memory_space<vmem>>, vector<1x1x32xf32>
    %365 = vector.shape_cast %364 : vector<1x1x32xf32> to vector<1x32xf32>
    %366 = vector.broadcast %365 : vector<1x32xf32> to vector<8x32xf32>
    %367 = arith.addf %363, %366 : vector<8x32xf32>
    %368 = arith.addf %317, %367 : vector<8x32xf32>
    %c0_179 = arith.constant 0 : index
    %c0_180 = arith.constant 0 : index
    %c0_181 = arith.constant 0 : index
    %369 = vector.load %arg20[%c0_179, %c0_180, %c0_181] : memref<1x8x32xf32, #tpu.memory_space<vmem>>, vector<1x8x32xf32>
    %370 = vector.shape_cast %369 : vector<1x8x32xf32> to vector<8x32xf32>
    %371 = vector.shape_cast %368 : vector<8x32xf32> to vector<1x8x32xf32>
    tpu.vector_store %arg20[%c0_179, %c0_180, %c0_181], %371 {strides = array<i32>} : memref<1x8x32xf32, #tpu.memory_space<vmem>>, vector<1x8x32xf32>,
    return
  }
  func.func @transform_0(%arg0: i32) -> (i32, i32, i32) {
    %c0_i32 = arith.constant 0 : i32
    %c0_i32_0 = arith.constant 0 : i32
    %c0_i32_1 = arith.constant 0 : i32
    return %arg0, %c0_i32, %c0_i32_0 : i32, i32, i32
  }
  func.func @transform_1(%arg0: i32) -> (i32, i32) {
    %c0_i32 = arith.constant 0 : i32
    %c0_i32_0 = arith.constant 0 : i32
    %c0_i32_1 = arith.constant 0 : i32
    return %c0_i32, %c0_i32_0 : i32, i32
  }
  func.func @transform_2(%arg0: i32) -> (i32, i32) {
    %c0_i32 = arith.constant 0 : i32
    %c0_i32_0 = arith.constant 0 : i32
    %c0_i32_1 = arith.constant 0 : i32
    return %c0_i32, %c0_i32_0 : i32, i32
  }
  func.func @transform_3(%arg0: i32) -> (i32, i32, i32) {
    %c0_i32 = arith.constant 0 : i32
    %c0_i32_0 = arith.constant 0 : i32
    %c0_i32_1 = arith.constant 0 : i32
    %c0_i32_2 = arith.constant 0 : i32
    return %c0_i32, %c0_i32_0, %c0_i32_1 : i32, i32, i32
  }
  func.func @transform_4(%arg0: i32) -> (i32, i32, i32) {
    %c0_i32 = arith.constant 0 : i32
    %c0_i32_0 = arith.constant 0 : i32
    %c0_i32_1 = arith.constant 0 : i32
    %c0_i32_2 = arith.constant 0 : i32
    return %c0_i32, %c0_i32_0, %c0_i32_1 : i32, i32, i32
  }
  func.func @transform_5(%arg0: i32) -> (i32, i32, i32) {
    %c0_i32 = arith.constant 0 : i32
    %c0_i32_0 = arith.constant 0 : i32
    %c0_i32_1 = arith.constant 0 : i32
    %c0_i32_2 = arith.constant 0 : i32
    return %c0_i32, %c0_i32_0, %c0_i32_1 : i32, i32, i32
  }
  func.func @transform_6(%arg0: i32) -> (i32, i32, i32) {
    %c0_i32 = arith.constant 0 : i32
    %c0_i32_0 = arith.constant 0 : i32
    %c0_i32_1 = arith.constant 0 : i32
    %c0_i32_2 = arith.constant 0 : i32
    return %c0_i32, %c0_i32_0, %c0_i32_1 : i32, i32, i32
  }
  func.func @transform_7(%arg0: i32) -> (i32, i32, i32) {
    %c0_i32 = arith.constant 0 : i32
    %c0_i32_0 = arith.constant 0 : i32
    %c0_i32_1 = arith.constant 0 : i32
    %c0_i32_2 = arith.constant 0 : i32
    return %c0_i32, %c0_i32_0, %c0_i32_1 : i32, i32, i32
  }
  func.func @transform_8(%arg0: i32) -> (i32, i32, i32) {
    %c0_i32 = arith.constant 0 : i32
    %c0_i32_0 = arith.constant 0 : i32
    %c0_i32_1 = arith.constant 0 : i32
    %c0_i32_2 = arith.constant 0 : i32
    return %c0_i32, %c0_i32_0, %c0_i32_1 : i32, i32, i32
  }
  func.func @transform_9(%arg0: i32) -> (i32, i32, i32) {
    %c0_i32 = arith.constant 0 : i32
    %c0_i32_0 = arith.constant 0 : i32
    %c0_i32_1 = arith.constant 0 : i32
    %c0_i32_2 = arith.constant 0 : i32
    return %c0_i32, %c0_i32_0, %c0_i32_1 : i32, i32, i32
  }
  func.func @transform_10(%arg0: i32) -> (i32, i32, i32) {
    %c0_i32 = arith.constant 0 : i32
    %c0_i32_0 = arith.constant 0 : i32
    %c0_i32_1 = arith.constant 0 : i32
    %c0_i32_2 = arith.constant 0 : i32
    return %c0_i32, %c0_i32_0, %c0_i32_1 : i32, i32, i32
  }
  func.func @transform_11(%arg0: i32) -> (i32, i32, i32) {
    %c0_i32 = arith.constant 0 : i32
    %c0_i32_0 = arith.constant 0 : i32
    %c0_i32_1 = arith.constant 0 : i32
    %c0_i32_2 = arith.constant 0 : i32
    return %c0_i32, %c0_i32_0, %c0_i32_1 : i32, i32, i32
  }
  func.func @transform_12(%arg0: i32) -> (i32, i32, i32) {
    %c0_i32 = arith.constant 0 : i32
    %c0_i32_0 = arith.constant 0 : i32
    %c0_i32_1 = arith.constant 0 : i32
    %c0_i32_2 = arith.constant 0 : i32
    return %c0_i32, %c0_i32_0, %c0_i32_1 : i32, i32, i32
  }
  func.func @transform_13(%arg0: i32) -> (i32, i32, i32) {
    %c0_i32 = arith.constant 0 : i32
    %c0_i32_0 = arith.constant 0 : i32
    %c0_i32_1 = arith.constant 0 : i32
    %c0_i32_2 = arith.constant 0 : i32
    return %c0_i32, %c0_i32_0, %c0_i32_1 : i32, i32, i32
  }
  func.func @transform_14(%arg0: i32) -> (i32, i32, i32) {
    %c0_i32 = arith.constant 0 : i32
    %c0_i32_0 = arith.constant 0 : i32
    %c0_i32_1 = arith.constant 0 : i32
    %c0_i32_2 = arith.constant 0 : i32
    return %c0_i32, %c0_i32_0, %c0_i32_1 : i32, i32, i32
  }
  func.func @transform_15(%arg0: i32) -> (i32, i32, i32) {
    %c0_i32 = arith.constant 0 : i32
    %c0_i32_0 = arith.constant 0 : i32
    %c0_i32_1 = arith.constant 0 : i32
    %c0_i32_2 = arith.constant 0 : i32
    return %c0_i32, %c0_i32_0, %c0_i32_1 : i32, i32, i32
  }
  func.func @transform_16(%arg0: i32) -> (i32, i32, i32) {
    %c0_i32 = arith.constant 0 : i32
    %c0_i32_0 = arith.constant 0 : i32
    %c0_i32_1 = arith.constant 0 : i32
    %c0_i32_2 = arith.constant 0 : i32
    return %c0_i32, %c0_i32_0, %c0_i32_1 : i32, i32, i32
  }
  func.func @transform_17(%arg0: i32) -> (i32, i32, i32) {
    %c0_i32 = arith.constant 0 : i32
    %c0_i32_0 = arith.constant 0 : i32
    %c0_i32_1 = arith.constant 0 : i32
    %c0_i32_2 = arith.constant 0 : i32
    return %c0_i32, %c0_i32_0, %c0_i32_1 : i32, i32, i32
  }
  func.func @transform_18(%arg0: i32) -> (i32, i32, i32) {
    %c0_i32 = arith.constant 0 : i32
    %c0_i32_0 = arith.constant 0 : i32
    %c0_i32_1 = arith.constant 0 : i32
    %c0_i32_2 = arith.constant 0 : i32
    return %c0_i32, %c0_i32_0, %c0_i32_1 : i32, i32, i32
  }
  func.func @transform_19(%arg0: i32) -> (i32, i32, i32) {
    %c0_i32 = arith.constant 0 : i32
    %c0_i32_0 = arith.constant 0 : i32
    %c0_i32_1 = arith.constant 0 : i32
    return %arg0, %c0_i32, %c0_i32_0 : i32, i32, i32
  }
}

</mosaic_0001>

<bundles_post_ra>
// kernel: tpu_custom_call.1
= control target key start
LH: loop header
LB: loop body
LE: loop exit
PB: predicated region body
PF: predicated region fallthrough
CT: control target
= control target key end

     0   :  { %s4786_s0 = inlined_call_operand.hbm [shape: f32[2,8,8], index: 0, kind: input, shape index: {}]   ;;  %s4787_s1 = inlined_call_operand.hbm [shape: bf16[8,32], index: 1, kind: input, shape index: {}]   ;;  %s4788_s2 = inlined_call_operand.hbm [shape: f32[8,32], index: 2, kind: input, shape index: {}]   ;;  %s4789_s3 = inlined_call_operand.hbm [shape: bf16[2,32,32], index: 3, kind: input, shape index: {}]   ;;  %s4790_s4 = inlined_call_operand.hbm [shape: bf16[2,32,32], index: 4, kind: input, shape index: {}]   ;;  %s4791_s5 = inlined_call_operand.hbm [shape: bf16[2,32,32], index: 5, kind: input, shape index: {}]   ;;  %s4792_s6 = inlined_call_operand.vmem [shape: f32[2,1,32], index: 6, kind: input, shape index: {}]   ;;  %s4793_s7 = inlined_call_operand.vmem [shape: f32[2,1,32], index: 7, kind: input, shape index: {}]   ;;  %s4794_s8 = inlined_call_operand.vmem [shape: f32[2,1,32], index: 8, kind: input, shape index: {}]   ;;  %s4795_s9 = inlined_call_operand.hbm [shape: bf16[2,32,32], index: 9, kind: input, shape index: {}]   ;;  %s4796_s10 = inlined_call_operand.vmem [shape: f32[2,1,32], index: 10, kind: input, shape index: {}]   ;;  %s4797_s11 = inlined_call_operand.vmem [shape: f32[2,1,32], index: 11, kind: input, shape index: {}]   ;;  %s4798_s12 = inlined_call_operand.vmem [shape: f32[2,1,32], index: 12, kind: input, shape index: {}]   ;;  %s4799_s13 = inlined_call_operand.vmem [shape: f32[2,1,32], index: 13, kind: input, shape index: {}]   ;;  %s4800_s14 = inlined_call_operand.vmem [shape: f32[2,1,32], index: 14, kind: input, shape index: {}]   ;;  %s4801_s15 = inlined_call_operand.hbm [shape: bf16[2,32,32], index: 15, kind: input, shape index: {}]   ;;  %s4802_s16 = inlined_call_operand.vmem [shape: f32[2,1,32], index: 16, kind: input, shape index: {}]   ;;  %s4803_s17 = inlined_call_operand.hbm [shape: bf16[2,32,32], index: 17, kind: input, shape index: {}]   ;;  %s4804_s18 = inlined_call_operand.vmem [shape: f32[2,1,32], index: 18, kind: input, shape index: {}]   ;;  %s4805_s19 = inlined_call_operand.hbm [shape: f32[2,8,32], index: 19, kind: output, shape index: {}]  }
   0x1   :  { %4821 = sst [smem:[#allocation27_spill]] %s4786_s0 }
   0x2   :  { %4822 = sst [smem:[#allocation28_spill]] %s4787_s1 }
   0x3   :  { %4823 = sst [smem:[#allocation29_spill]] %s4788_s2 }
   0x4   :  { %4824 = sst [smem:[#allocation30_spill]] %s4789_s3 }
   0x5   :  { %4825 = sst [smem:[#allocation31_spill]] %s4790_s4 }
   0x6   :  { %4826 = sst [smem:[#allocation32_spill]] %s4791_s5 }
   0x7   :  { %4827 = sst [smem:[#allocation33_spill]] %s4795_s9 }
   0x8   :  { %4828 = sst [smem:[#allocation34_spill]] %s4801_s15 }
   0x9   :  { %4829 = sst [smem:[#allocation35_spill]] %s4802_s16 }
   0xa   :  { %4830 = sst [smem:[#allocation36_spill]] %s4803_s17 }
   0xb   :  { %4831 = sst [smem:[#allocation37_spill]] %s4804_s18 }
   0xc   :  { %4832 = sst [smem:[#allocation38_spill]] %s4805_s19 }
   0xd   :  { %24 = vsyncpa [#allocation3], 0 }
   0xe   :  { %26 = vsyncpa [#allocation3 + $0x1], 0 }
   0xf   :  { %27 = vsyncpa [#allocation6], 0 }
  0x10   :  { %28 = vsyncpa [#allocation9], 0 }
  0x11   :  { %29 = vsyncpa [#allocation12], 0 }
  0x12   :  { %30 = vsyncpa [#allocation15], 0 }
  0x13   :  { %31 = vsyncpa [#allocation4], 0 }
  0x14   :  { %33 = vsyncpa [#allocation4 + $0x1], 0  ;;  %s4240_s0 = smov 0   ;;  %s4242_s30 = smov 0  }
  0x15   :  { %s4244_s20 = smov 0   ;;  %s4246_s21 = smov 0  }
  0x16 LB: > { %4833 = sst [smem:[#allocation24_spill]] %s4114_s20  ;;  %s4120_s1 = smov [#allocation5]   ;;  %s4118_s21 = sphi %s4246_s21, %s4871_s21   ;;  %s4114_s20 = sphi %s4244_s20, %s4873_s20   ;;  %s4110_s30 = sphi %s4242_s30, %s4875_s30   ;;  %s4106_s0 = sphi %s4240_s0, %s4874_s0  }
  0x17   : > { %s487_s22 = sshll.u32 %s4120_s1, 4  ;;  %s4261_s2 = sadd.s32 4294967295, %s4118_s21   ;;  %s488_s22 = int_to_ptr.vmem [resolvable:$true] %s487_s22 }
  0x18   : > { %p3227_p0 = scmp.ge.s32.totalorder %s4118_s21, 1  ;;  %p4814_p1 = scmp.eq.s32.totalorder %s4261_s2, 0 }
  0x19   : > { %p474_p2 = scmp.lt.s32.totalorder %s4118_s21, 3  ;;  %s4121_s24 = smov [#allocation8]  }
  0x1a   : > { %s508_s25 = sshll.u32 %s4121_s24, 4  ;;  %s4122_s26 = smov [#allocation11]   ;;  %s4273_s25 = int_to_ptr.vmem [resolvable:$true] %s508_s25 }
  0x1b   : > { %p4266_p3 = pnand %p3227_p0, %p474_p2  ;;  %s534_s27 = sshll.u32 %s4122_s26, 4  ;;  %s4281_s27 = int_to_ptr.vmem [resolvable:$true] %s534_s27 }
  0x1c   : > { %s3813_s29 = scalar_lea.vmem %s488_s22, 64  ;;  %p3821_p11 = scmp.lt.s32.totalorder %s488_s22, %s488_s22 }
  0x1d   : > { %s4834_s23 = scalar_select %p4266_p3, 1, 0 }
  0x1e   : > { %p3633_p5 = pneg %p4266_p3  ;;  %p3814_p8 = scmp.ne.s32.totalorder %s488_s22, %s3813_s29 }
  0x1f   : > { %p3822_p12 = scmp.lt.s32.totalorder %s3813_s29, %s3813_s29 }
  0x20   : > { %p4277_p6 = pnand %p3633_p5, %p4814_p1 }
  0x21   : > { %p3823_p13 = por %p3822_p12, %p3821_p11 }
  0x22   : > { %p4285_p7 = pneg %p4277_p6 }
  0x24   : > { %p3816_p9 = pnand %p3814_p8, %p4285_p7 }
  0x26   : > { %p3817_p10 = pneg %p3816_p9 }
  0x28   : > { %p3824_p0 = pnand %p3823_p13, %p3817_p10 }
  0x2a   : > { %3827 = shalt.err (!%p3824_p0)
}
  0x2b   : > { %s4837_s26 = sld [smem:[#allocation28_spill]]  ;;  %s3839_s19 = scalar_lea.vmem %s4273_s25, 512 }
  0x2c   : > { %p3840_p2 = scmp.ne.s32.totalorder %s4273_s25, %s3839_s19  ;;  %p3847_p9 = scmp.lt.s32.totalorder %s4273_s25, %s4273_s25 }
  0x2d   : > { %p3848_p11 = scmp.lt.s32.totalorder %s3839_s19, %s3839_s19 }
  0x2e   : > { %p3842_p5 = pnand %p3840_p2, %p4285_p7 }
  0x2f   : > { %p3849_p10 = por %p3848_p11, %p3847_p9 }
  0x30   : > { %p3843_p8 = pneg %p3842_p5 }
  0x31   : > { %3636 = dma.hbm_to_vmem [thread:$0]  (!%p4277_p6), %s4837_s26, 64, %s488_s22, [#allocation6]  }
  0x32   : > { %p3850_p12 = pnand %p3849_p10, %p3843_p8 }
  0x34   : > { %3853 = shalt.err (!%p3850_p12)
}
  0x35   : > { %s4810_s29 = smov 64   ;;  %s4812_s1 = smov 4  }
  0x36   : > { %s4838_s26 = sld [smem:[#allocation30_spill]]  ;;  %s3865_s19 = scalar_lea.vmem %s4281_s27, 512 }
  0x37   : > { %p3866_p13 = scmp.ne.s32.totalorder %s4281_s27, %s3865_s19  ;;  %p3873_p5 = scmp.lt.s32.totalorder %s4281_s27, %s4281_s27 }
  0x38   : > { %p3874_p8 = scmp.lt.s32.totalorder %s3865_s19, %s3865_s19 }
  0x39   : > { %p3868_p0 = pnand %p3866_p13, %p4285_p7 }
  0x3a   : > { %p3875_p9 = por %p3874_p8, %p3873_p5 }
  0x3b   : > { %p3869_p2 = pneg %p3868_p0 }
  0x3c   : > { %3642 = dma.hbm_to_vmem [thread:$0]  (!%p4277_p6), %s4838_s26, 512, %s4273_s25, [#allocation9], %s4810_s29, %s4810_s29, %s4812_s1  }
  0x3d   : > { %p3876_p11 = pnand %p3875_p9, %p3869_p2 }
  0x3f   : > { %3879 = shalt.err (!%p3876_p11)
}
  0x40   : > { %s4839_s5 = sld [smem:[#allocation32_spill]]  ;;  %s4125_s25 = smov [#allocation14]  }
  0x41   : > { %s584_s24 = sshll.u32 %s4125_s25, 4  ;;  %s4126_s26 = smov [#allocation7]   ;;  %s585_s24 = int_to_ptr.vmem [resolvable:$true] %s584_s24 }
  0x42   : > { %s498_s16 = sshll.u32 %s4126_s26, 4  ;;  %s3891_s19 = scalar_lea.vmem %s585_s24, 512  ;;  %s499_s16 = int_to_ptr.vmem [resolvable:$true] %s498_s16 }
  0x43   : > { %p3892_p10 = scmp.ne.s32.totalorder %s585_s24, %s3891_s19  ;;  %p3899_p0 = scmp.lt.s32.totalorder %s585_s24, %s585_s24 }
  0x44   : > { %p3900_p2 = scmp.lt.s32.totalorder %s3891_s19, %s3891_s19 }
  0x45   : > { %p3894_p12 = pnand %p3892_p10, %p4285_p7 }
  0x46   : > { %3648 = dma.hbm_to_vmem [thread:$0]  (!%p4277_p6), %s4839_s5, 512, %s4281_s27, [#allocation12], %s4810_s29, %s4810_s29, %s4812_s1  }
  0x47   : > { %p3895_p13 = pneg %p3894_p12  ;;  %p3901_p5 = por %p3900_p2, %p3899_p0 }
  0x49   : > { %p3902_p8 = pnand %p3901_p5, %p3895_p13 }
  0x4b   : > { %3905 = shalt.err (!%p3902_p8)
}
  0x4c   : > { %s4840_s15 = sld [smem:[#allocation34_spill]]  ;;  %s3917_s22 = scalar_lea.vmem %s499_s16, 128 }
  0x4d   : > { %p3918_p9 = scmp.ne.s32.totalorder %s499_s16, %s3917_s22  ;;  %p3925_p12 = scmp.lt.s32.totalorder %s499_s16, %s499_s16 }
  0x4e   : > { %p3926_p0 = scmp.lt.s32.totalorder %s3917_s22, %s3917_s22 }
  0x4f   : > { %p3920_p11 = pnand %p3918_p9, %p4285_p7 }
  0x50   : > { %p3927_p13 = por %p3926_p0, %p3925_p12 }
  0x51   : > { %p3921_p10 = pneg %p3920_p11 }
  0x52   : > { %3654 = dma.hbm_to_vmem [thread:$0]  (!%p4277_p6), %s4840_s15, 512, %s585_s24, [#allocation15], %s4810_s29, %s4810_s29, %s4812_s1  }
  0x53   : > { %p3928_p2 = pnand %p3927_p13, %p3921_p10 }
  0x55   : > { %3931 = shalt.err (!%p3928_p2)
}
  0x56   : > { %s4841_s19 = sld [smem:[#allocation29_spill]]  ;;  %s4127_s18 = smov [#allocation10]  }
  0x57   : > { %s521_s24 = sshll.u32 %s4127_s18, 4  ;;  %s4128_s27 = smov [#allocation13]   ;;  %s522_s24 = int_to_ptr.vmem [resolvable:$true] %s521_s24 }
  0x58   : > { %s556_s29 = sshll.u32 %s4128_s27, 4  ;;  %s3943_s1 = scalar_lea.vmem %s522_s24, 512  ;;  %s557_s29 = int_to_ptr.vmem [resolvable:$true] %s556_s29 }
  0x59   : > { %p3944_p5 = scmp.ne.s32.totalorder %s522_s24, %s3943_s1  ;;  %p3951_p11 = scmp.lt.s32.totalorder %s522_s24, %s522_s24 }
  0x5a   : > { %p3952_p10 = scmp.lt.s32.totalorder %s3943_s1, %s3943_s1 }
  0x5b   : > { %p3946_p8 = pnand %p3944_p5, %p4285_p7 }
  0x5c   : > { %3639 = dma.hbm_to_vmem [thread:$0]  (!%p4277_p6), %s4841_s19, 128, %s499_s16, [#allocation6]  }
  0x5d   : > { %p3947_p9 = pneg %p3946_p8  ;;  %p3953_p12 = por %p3952_p10, %p3951_p11 }
  0x5f   : > { %p3954_p0 = pnand %p3953_p12, %p3947_p9 }
  0x61   : > { %3957 = shalt.err (!%p3954_p0)
}
  0x62   : > { %s4842_s22 = smov 4   ;;  %s4843_s25 = smov 64  }
  0x63   : > { %s4844_s4 = sld [smem:[#allocation31_spill]]  ;;  %s3969_s19 = scalar_lea.vmem %s557_s29, 512 }
  0x64   : > { %p3970_p13 = scmp.ne.s32.totalorder %s557_s29, %s3969_s19  ;;  %p3977_p8 = scmp.lt.s32.totalorder %s557_s29, %s557_s29 }
  0x65   : > { %p3978_p11 = scmp.lt.s32.totalorder %s3969_s19, %s3969_s19 }
  0x66   : > { %p3972_p2 = pnand %p3970_p13, %p4285_p7 }
  0x67   : > { %p3979_p9 = por %p3978_p11, %p3977_p8 }
  0x68   : > { %p3973_p5 = pneg %p3972_p2 }
  0x69   : > { %3645 = dma.hbm_to_vmem [thread:$0]  (!%p4277_p6), %s4844_s4, 512, %s522_s24, [#allocation9], %s4843_s25, %s4843_s25, %s4842_s22  }
  0x6a   : > { %p3980_p10 = pnand %p3979_p9, %p3973_p5 }
  0x6c   : > { %3983 = shalt.err (!%p3980_p10)
}
  0x6d   : > { %s4845_s9 = sld [smem:[#allocation33_spill]]  ;;  %s4129_s24 = smov [#allocation16]  }
  0x6e   : > { %s600_s27 = sshll.u32 %s4129_s24, 4  ;;  %s601_s27 = int_to_ptr.vmem [resolvable:$true] %s600_s27 }
  0x6f   : > { %s3995_s16 = scalar_lea.vmem %s601_s27, 512  ;;  %p4003_p2 = scmp.lt.s32.totalorder %s601_s27, %s601_s27 }
  0x70   : > { %p3996_p12 = scmp.ne.s32.totalorder %s601_s27, %s3995_s16  ;;  %p4004_p5 = scmp.lt.s32.totalorder %s3995_s16, %s3995_s16 }
  0x72   : > { %p3998_p0 = pnand %p3996_p12, %p4285_p7  ;;  %p4005_p8 = por %p4004_p5, %p4003_p2 }
  0x73   : > { %3651 = dma.hbm_to_vmem [thread:$0]  (!%p4277_p6), %s4845_s9, 512, %s557_s29, [#allocation12], %s4843_s25, %s4843_s25, %s4842_s22  }
  0x74   : > { %p3999_p13 = pneg %p3998_p0 }
  0x76   : > { %p4006_p11 = pnand %p4005_p8, %p3999_p13 }
  0x78   : > { %4009 = shalt.err (!%p4006_p11)
}
  0x79   : > { %s4846_s17 = sld [smem:[#allocation36_spill]]  ;;  %s3226_s3 = sadd.s32 4294967294, %s4118_s21  }
  0x7a   : > { %s4375_s28 = sadd.s32 1, %s4118_s21   ;;  %s46_s1 = sadd.s32 1, %s4114_s20 }
  0x7b   : > { %4847 = sst [smem:[#allocation25_spill]] %s4375_s28  ;;  %s43_s19 = ssub.s32 %s4118_s21, %s4375_s28 }
  0x7c   : > { %p44_p7 = scmp.eq.s32.totalorder %s43_s19, 0  ;;  %p53_p9 = scmp.ne.s32.totalorder %s4114_s20, %s4110_s30 }
  0x7d   : > { %p54_p10 = scmp.eq.s32.totalorder %s4118_s21, 0  ;;  %p59_p12 = scmp.ne.s32.totalorder %s4110_s30, %s4106_s0 }
  0x7e   : > { %s4386_s18 = scalar_select %p44_p7, %s4114_s20, %s46_s1  }
  0x7f   : > { %3657 = dma.hbm_to_vmem [thread:$0]  (!%p4277_p6), %s4846_s17, 512, %s601_s27, [#allocation15], %s4843_s25, %s4843_s25, %s4842_s22  }
  0x80   : > { %4848 = sst [smem:[#allocation26_spill]] %s4386_s18  ;;  %p4388_p0 = por %p54_p10, %p53_p9 }
  0x81   : > { %p4394_p6 = por %p4814_p1, %p59_p12  ;;  %p461_p13 = scmp.eq.s32.totalorder %s4261_s2, 1 }
  0x82   : > { %p467_p2 = scmp.eq.s32.totalorder %s3226_s3, 1  ;;  %p3674_p5 = scmp.lt.s32.totalorder %s4118_s21, 2 }
  0x83   : > { %s4850_s22 = scalar_select %p4394_p6, 1, 0 }
  0x84   : > { %s617_s25 = sand.u32 1, %s4114_s20   ;;  %p4401_p8 = por %p461_p13, %p53_p9 }
  0x85   : > { %p4405_p11 = por %p467_p2, %p59_p12  ;;  %s3237_s26 = sshll.u32 %s617_s25, 3 }
  0x86   : > { %s4851_s27 = scalar_select %p4401_p8, 1, 0 }
  0x87   : > { %s4852_s16 = scalar_select %p4405_p11, 1, 0 }
  0x88   : > { %s3238_s29 = sshll.u32 %s4118_s21, 7  ;;  %s4853_s4 = sld [smem:[#allocation27_spill]] }
  0x89   : > { %s621_s3 = scalar_lea.vmem [#allocation2], %s3237_s26  ;;  %p4417_p7 = pnand %p3674_p5, %p4388_p0 }
  0x8a   : > { %s628_s9 = sshll.u32 %s621_s3, 4  ;;  %s618_s17 = scalar_lea.sflag [#allocation3], %s617_s25  ;;  %s629_s9 = int_to_ptr.vmem [resolvable:$true] %s628_s9 }
  0x8b   : > { %p4012_p10 = pneg %p4417_p7 }
  0x8e   : > { %s4413_s5 = scalar_lea.hbm %s4853_s4, %s3238_s29  ;;  %s4015_s1 = scalar_lea.hbm %s4853_s4, 256 }
  0x8f   : > { %s4010_s18 = scalar_lea.hbm %s4413_s5, 128  ;;  %p4016_p2 = scmp.lt.s32.totalorder %s4413_s5, %s4853_s4 }
  0x90   : > { %p4011_p9 = scmp.ne.s32.totalorder %s4413_s5, %s4010_s18  ;;  %p4017_p0 = scmp.lt.s32.totalorder %s4015_s1, %s4010_s18 }
  0x92   : > { %p4013_p12 = pnand %p4012_p10, %p4011_p9  ;;  %p4018_p5 = por %p4017_p0, %p4016_p2 }
  0x94   : > { %p4014_p13 = pneg %p4013_p12 }
  0x96   : > { %p4019_p4 = pnand %p4018_p5, %p4014_p13 }
  0x98   : > { %4022 = shalt.err (!%p4019_p4)
}
  0x99   : > { %s4023_s24 = scalar_lea.vmem %s629_s9, 128  ;;  %s4130_s25 = smov [#allocation2]  }
  0x9a   : > { %p4024_p1 = scmp.ne.s32.totalorder %s629_s9, %s4023_s24  ;;  %s4028_s20 = sshll.u32 %s4130_s25, 4  ;;  %s4029_s20 = int_to_ptr.vmem [resolvable:$false] %s4028_s20 }
  0x9b   : > { %s4030_s28 = scalar_lea.vmem %s4029_s20, 256  ;;  %p4031_p9 = scmp.lt.s32.totalorder %s629_s9, %s4029_s20 }
  0x9c   : > { %p4026_p11 = pnand %p4024_p1, %p4012_p10  ;;  %p4032_p12 = scmp.lt.s32.totalorder %s4030_s28, %s4023_s24 }
  0x9e   : > { %p4027_p8 = pneg %p4026_p11  ;;  %p4033_p6 = por %p4032_p12, %p4031_p9 }
  0xa0   : > { %p4034_p3 = pnand %p4033_p6, %p4027_p8 }
  0xa2   : > { %4037 = shalt.err (!%p4034_p3)
}
  0xa3   : > { %3661 = dma.hbm_to_vmem [thread:$0]  (!%p4417_p7), %s4413_s5, 128, %s629_s9, %s618_s17  }
  0xa4   : > { %p4855_p13 = scmp.ne.s32.totalorder %s4834_s23, 0 }
  0xa5   : > { %s4438_s18 = sand.u32 (!%p4855_p13), 1, %s4110_s30   ;;  %p4856_p1 = scmp.ne.s32.totalorder (!%p4855_p13), %s4850_s22, 0 }
  0xa6   : > { %637 = sbr.rel (%p4855_p13) target bundleno = 5230 (0x146e), region = 96  ;;  %s3240_s29 = sshll.u32 (!%p4855_p13), %s4438_s18, 3 }
  0xa7   : > { %s640_s20 = scalar_lea.sflag (!%p4855_p13), [#allocation3], %s4438_s18  ;;  %s643_s28 = scalar_lea.vmem (!%p4855_p13), [#allocation2], %s3240_s29 }
  0xab   : > { %4081 = dma.done.wait (%p4856_p1), %s640_s20, 128  }
  0xac   : > { %4083 = vsyncadd (%p4856_p1), %s640_s20, 4294967168  ;;  %p4857_p3 = scmp.eq.s32.totalorder %s4261_s2, 0 }
  0xae   : > { %4085 = dma.done.wait (%p4857_p3), [#allocation6], 192   ;;  %p4858_p4 = pmov %p4857_p3 }
  0xaf   : > { %p4859_p6 = pmov %p4857_p3 }
  0xb0   : > { %4087 = vsyncadd (%p4858_p4), [#allocation6], 4294967104 }
  0xb1   : > { %4089 = dma.done.wait (%p4859_p6), [#allocation9], 1024   ;;  %p4860_p8 = pmov %p4857_p3 }
  0xb2   : > { %p4861_p11 = pmov %p4857_p3 }
  0xb3   : > { %4091 = vsyncadd (%p4860_p8), [#allocation9], 4294966272 }
  0xb4   : > { %4093 = dma.done.wait (%p4861_p11), [#allocation12], 1024   ;;  %p4862_p7 = pmov %p4857_p3 }
  0xb5   : > { %p4863_p10 = pmov %p4857_p3 }
  0xb6   : > { %4095 = vsyncadd (%p4862_p7), [#allocation12], 4294966272 }
  0xb7   : > { %4097 = dma.done.wait (%p4863_p10), [#allocation15], 1024   ;;  %p4864_p2 = pmov %p4857_p3 }
  0xb8   : > { %v4131_v0 = vmov 0.0   ;;  %vm4132_vm0 = vmmov 0   ;;  %vm739_vm1 = vcmask 1043456   ;;  %v733_v1 = vld [vmem:[#allocation5] sm:$0xf]  ;;  %v731_v2 = vld [vmem:[%s643_s28] sm:$0xff] }
  0xb9   : > { %4099 = vsyncadd (%p4864_p2), [#allocation15], 4294966272  ;;  %3415 = vmatprep.subr.bf16.mxu0 %v4131_v0  ;;  %3417 = vmatprep.mubr.msk.bf16.mxu0 %vm4132_vm0, %v4131_v0  ;;  %v741_v3 = vsel %vm739_vm1, %v733_v1, 0  ;;  %v732_v4 = vpack.c.bf16 %v731_v2, %v731_v2  ;;  %vm735_vm2 = vcmask 64512   ;;  %v734_v5 = vld [vmem:[#allocation7] sm:$0xff]  ;;  %vm785_vm3 = vcmask 261120  }
  0xba   : > { %3421 = vmatprep.subr.bf16.mxu1 %v4131_v0  ;;  %3425 = vmatprep.mubr.msk.bf16.mxu1 %vm4132_vm0, %v4131_v0  ;;  %v3734_v17 = vld [vmem:[#allocation8 + $0x8] sm:$0xff]   ;;  %v3736_v19 = vld [vmem:[#allocation8] sm:$0xff]   ;;  %s4133_s26 = smov 112   ;;  %s4134_s3 = smov 120   ;;  %vm1677_vm4 = vcmask 130048   ;;  %vm1679_vm5 = vcmask 195584  }
  0xbb   : > { %3416 = vmatpush3.bf16.msra.mxu0 %v741_v3  ;;  %v3735_v18 = vld [vmem:[#allocation10 + $0x8] sm:$0xff]   ;;  %3422 = vmatpush3.bf16.msra.mxu1 %v3734_v17  ;;  %v3737_v20 = vld [vmem:[#allocation10] sm:$0xff]   ;;  %s4135_s20 = smov 104   ;;  %s4136_s28 = smov 8  }
  0xbc   : > { %3429 = vmatprep.subr.bf16.mxu0 %v4131_v0  ;;  %3423 = vmatprep.subr.bf16.mxu1 %v4131_v0  ;;  %v3251_v25 = vld [vmem:[%s4797_s11] ss:$0 sm:$0xff]  ;;  %v3738_v30 = vld [vmem:[#allocation11 + $0x8] sm:$0xff]   ;;  %s4137_s5 = smov 16   ;;  %s4138_s9 = smov 24  }
  0xbd   : > { %v3252_v27 = vld [vmem:[%s4798_s12] ss:$0 sm:$0xff]  ;;  %s4865_s15 = sld [smem:[#allocation35_spill]]  ;;  %s3342_s24 = sshll.u32 %s4261_s2, 7 }
  0xbe   : > { %3418 = vmatmul.mubr.msk.bf16.vlgmr.msra.gmra.mxu0 %vm735_vm2, %v732_v4  ;;  %v3739_v32 = vld [vmem:[#allocation11] sm:$0xff]   ;;  %s4866_s22 = sld [smem:[#allocation37_spill]]  ;;  %s729_s25 = scalar_lea.vmem [#allocation17], %s3240_s29 }
  0xbf   : > { %3433 = vmatprep.mubr.msk.bf16.mxu0 %vm4132_vm0, %v4131_v0  ;;  %3430 = vmatpush3.bf16.msra.mxu0 %v3735_v18  ;;  %v3253_v33 = vld [vmem:[%s4792_s6] ss:$0 sm:$0xff]  ;;  %s3067_s2 = scalar_lea.sflag [#allocation4], %s4438_s18  ;;  %p4868_p5 = scmp.ne.s32.totalorder %s4851_s27, 0 }
  0xc0   : > { %3431 = vmatprep.subr.bf16.mxu0 %v4131_v0  ;;  %3424 = vmatpush3.bf16.msra.mxu1 %v3736_v19  ;;  %v3257_v34 = vld [vmem:[%s4793_s7] ss:$0 sm:$0xff] }
  0xc1   : > { %3437 = vmatprep.subr.bf16.mxu1 %v4131_v0  ;;  %v3261_v46 = vld [vmem:[%s4794_s8] ss:$0 sm:$0xff] }
  0xc3   : > { %3432 = vmatpush3.bf16.msra.mxu0 %v3737_v20 }
  0xc4   : > { %3445 = vmatprep.subr.mxu0 %v4131_v0 }
 0x17e   : > { %v777_v6 = vpop.f32.mrf.mxu0 }
 0x17f   : > { %v4474_v7 = vadd.f32 %v777_v6, %v734_v5 }
 0x180   : > { %v3419_v8 = vpop.f32.mrf.mxu0 }
 0x181   : > { %v786_v9 = vsel %vm785_vm3, %v4474_v7, 0.0 }
 0x182   : > { %787 = vadd.xlane.f32.xlu0 %v786_v9  ;;  %v780_v10 = vpop.f32.mrf.mxu0 }
 0x184   : > { %v3420_v11 = vpop.f32.mrf.mxu0 }
 0x20b   : > { %v788_v12 = vpop.xlane.xlu0 %787 }
 0x20c   : > { %v790_v13 = vmul.f32 0.03125, %v788_v12 }
 0x20e   : > { %v791_v14 = vsub.f32 %v4474_v7, %v790_v13 }
 0x210   : > { %v792_v15 = vmul.f32 %v791_v14, %v791_v14 }
 0x212   : > { %v793_v16 = vsel %vm785_vm3, %v792_v15, 0.0 }
 0x213   : > { %794 = vadd.xlane.f32.xlu0 %v793_v16 }
 0x29c   : > { %v795_v21 = vpop.xlane.xlu0 %794 }
 0x29d   : > { %v796_v22 = vmul.f32 0.03125, %v795_v21 }
 0x29f   : > { %v797_v23 = vadd.f32 1e-05, %v796_v22 }
 0x2a1   : > { %3758 = vrsqrt.f32 %v797_v23 }
 0x2ae   : > { %v3759_v24 = vpop.eup %3758 }
 0x2af   : > { %v799_v26 = vmul.f32 %v3759_v24, %v791_v14 }
 0x2b1   : > { %v806_v28 = vmul.f32 %v3251_v25, %v799_v26 }
 0x2b3   : > { %v813_v29 = vadd.f32 %v3252_v27, %v806_v28 }
 0x2b5   : > { %v814_v31 = vpack.c.bf16 %v813_v29, %v813_v29 }
 0x2b7   : > { %3426 = vmatmul.mubr.msk.bf16.vlgmr.msra.gmra.mxu1 %vm785_vm3, %v814_v31  ;;  %3434 = vmatmul.mubr.msk.bf16.vlgmr.msra.gmra.mxu0 %vm785_vm3, %v814_v31 }
 0x2b8   : > { %3438 = vmatpush3.bf16.msra.mxu1 %v3738_v30  ;;  %3441 = vmatprep.mubr.msk.bf16.mxu1 %vm4132_vm0, %v4131_v0 }
 0x2b9   : > { %3439 = vmatprep.subr.bf16.mxu1 %v4131_v0  ;;  %3447 = vmatprep.mubr.msk.f32.mxu0 %vm4132_vm0, %v4131_v0 }
 0x2bc   : > { %3440 = vmatpush3.bf16.msra.mxu1 %v3739_v32 }
 0x2bd   : > { %3455 = vmatprep.subr.mxu1 %v4131_v0 }
 0x2bf   : > { %3442 = vmatmul.mubr.msk.bf16.vlgmr.msra.gmra.mxu1 %vm785_vm3, %v814_v31 }
 0x2c0   : > { %3457 = vmatprep.mubr.msk.f32.mxu1 %vm4132_vm0, %v4131_v0 }
 0x377   : > { %v875_v35 = vpop.f32.mrf.mxu1  ;;  %v938_v36 = vpop.f32.mrf.mxu0 }
 0x378   : > { %v876_v37 = vadd.f32 %v3253_v33, %v875_v35  ;;  %v939_v38 = vadd.f32 %v3257_v34, %v938_v36 }
 0x379   : > { %v3427_v39 = vpop.f32.mrf.mxu1  ;;  %v3435_v40 = vpop.f32.mrf.mxu0 }
 0x37a   : > { %v1007_v41 = vmul.f32 0.35355338, %v876_v37  ;;  %1336 = vrot.lane.b32.xlu0 %v939_v38, %s4133_s26  ;;  %1170 = vrot.lane.b32.xlu1 %v939_v38, %s4134_s3 }
 0x37b   : > { %3446 = vmatpush3.xpose.msk.msra.mxu0 %vm735_vm2, %v939_v38  ;;  %v878_v42 = vpop.f32.mrf.mxu1  ;;  %v941_v43 = vpop.f32.mrf.mxu0 }
 0x37c   : > { %3450 = vmatprep.subr.mxu0 %v4131_v0 }
 0x37d   : > { %v3428_v44 = vpop.f32.mrf.mxu1  ;;  %v3436_v45 = vpop.f32.mrf.mxu0 }
 0x37e   : > { %3448 = vmatmul.mubr.msk.f32.vlgmr.msra.gmra.mxu0 %vm735_vm2, %v1007_v41  ;;  %1501 = vrot.lane.b32.xlu1 %v939_v38, %s4135_s20  ;;  %v3740_v45 = vld [vmem:[#allocation13 + $0x8] sm:$0xff]  }
 0x37f   : > { %v1001_v47 = vpop.f32.mrf.mxu1  ;;  %3452 = vmatprep.mubr.msk.f32.mxu0 %vm4132_vm0, %v4131_v0 }
 0x380   : > { %v4518_v48 = vadd.f32 %v3261_v46, %v1001_v47 }
 0x381   : > { %v3443_v49 = vpop.f32.mrf.mxu1 }
 0x382   : > { %1168 = vrot.lane.b32.xlu1 %v1007_v41, %s4134_s3  ;;  %3451 = vmatpush3.msra.mxu0 %v4518_v48 }
 0x383   : > { %v1004_v50 = vpop.f32.mrf.mxu1  ;;  %3460 = vmatprep.subr.mxu0 %v4131_v0 }
 0x384   : > { %v3741_v50 = vld [vmem:[#allocation13] sm:$0xff]  }
 0x385   : > { %v3444_v51 = vpop.f32.mrf.mxu1 }
 0x386   : > { %1334 = vrot.lane.b32.xlu1 %v1007_v41, %s4133_s26 }
 0x38a   : > { %1499 = vrot.lane.b32.xlu1 %v1007_v41, %s4135_s20 }
 0x3ec   : > { %v1171_v52 = vpop.permute.xlu1 %1170  ;;  %v1337_v55 = vpop.permute.xlu0 %1336 }
 0x3ed   : > { %3456 = vmatpush3.xpose.msk.msra.mxu1 %vm735_vm2, %v1171_v52 }
 0x3ee   : > { %3465 = vmatprep.subr.mxu1 %v4131_v0 }
 0x3f0   : > { %v1502_v53 = vpop.permute.xlu1 %1501 }
 0x3f4   : > { %v1169_v54 = vpop.permute.xlu1 %1168 }
 0x3f5   : > { %3458 = vmatmul.mubr.msk.f32.vlgmr.msra.gmra.mxu1 %vm735_vm2, %v1169_v54 }
 0x3f6   : > { %3466 = vmatpush3.xpose.msk.msra.mxu1 %vm735_vm2, %v1337_v55  ;;  %3467 = vmatprep.mubr.msk.f32.mxu1 %vm4132_vm0, %v4131_v0 }
 0x3f7   : > { %3475 = vmatprep.subr.mxu1 %v4131_v0 }
 0x3f8   : > { %v1335_v56 = vpop.permute.xlu1 %1334 }
 0x3f9   : > { %3468 = vmatmul.mubr.msk.f32.vlgmr.msra.gmra.mxu1 %vm735_vm2, %v1335_v56 }
 0x3fa   : > { %3476 = vmatpush3.xpose.msk.msra.mxu1 %vm735_vm2, %v1502_v53  ;;  %3477 = vmatprep.mubr.msk.f32.mxu1 %vm4132_vm0, %v4131_v0 }
 0x3fb   : > { %3485 = vmatprep.subr.bf16.mxu1 %v4131_v0 }
 0x3fc   : > { %v1500_v57 = vpop.permute.xlu1 %1499 }
 0x3fd   : > { %3478 = vmatmul.mubr.msk.f32.vlgmr.msra.gmra.mxu1 %vm735_vm2, %v1500_v57 }
 0x3fe   : > { %3489 = vmatprep.mubr.msk.bf16.mxu1 %vm4132_vm0, %v4131_v0  ;;  %3486 = vmatpush3.bf16.msra.mxu1 %v3740_v45 }
 0x3ff   : > { %3487 = vmatprep.subr.bf16.mxu1 %v4131_v0 }
 0x402   : > { %3488 = vmatpush3.bf16.msra.mxu1 %v3741_v50  ;;  %v3747_v50 = vld [vmem:[#allocation10 + $0x18] sm:$0xff]  }
 0x403   : > { %3501 = vmatprep.subr.bf16.mxu1 %v4131_v0 }
 0x43e   : > { %v1080_v58 = vpop.f32.mrf.mxu0 }
 0x43f   : > { %v1084_v59 = vsel %vm735_vm2, %v1080_v58, -inf }
 0x440   : > { %1085 = vmax.xlane.f32.xlu1 %v1084_v59  ;;  %v3449_v60 = vpop.f32.mrf.mxu0 }
 0x441   : > { %v3277_v60 = vld [vmem:[%s4796_s10] ss:$0 sm:$0xff] }
 0x4b5   : > { %v1242_v61 = vpop.f32.mrf.mxu1 }
 0x4b6   : > { %v1246_v62 = vsel %vm735_vm2, %v1242_v61, -inf }
 0x4b7   : > { %1247 = vmax.xlane.f32.xlu0 %v1246_v62  ;;  %v3459_v63 = vpop.f32.mrf.mxu1 }
 0x4b9   : > { %v1408_v1 = vpop.f32.mrf.mxu1 }
 0x4ba   : > { %v1412_v2 = vsel %vm735_vm2, %v1408_v1, -inf }
 0x4bb   : > { %v3469_v3 = vpop.f32.mrf.mxu1  ;;  %1413 = vmax.xlane.f32.xlu1 %v1412_v2 }
 0x4bd   : > { %v1573_v4 = vpop.f32.mrf.mxu1 }
 0x4be   : > { %v1577_v5 = vsel %vm735_vm2, %v1573_v4, -inf }
 0x4bf   : > { %v3479_v6 = vpop.f32.mrf.mxu1  ;;  %1578 = vmax.xlane.f32.xlu1 %v1577_v5 }
 0x4c9   : > { %v1086_v8 = vpop.xlane.xlu1 %1085 }
 0x4ca   : > { %v1087_v9 = vsub.f32 %v1080_v58, %v1086_v8 }
 0x4cc   : > { %v1088_v10 = vmul.f32 1.442695, %v1087_v9 }
 0x4ce   : > { %3760 = vpow2.f32 %v1088_v10 }
 0x4db   : > { %v3761_v11 = vpop.eup %3760 }
 0x4dc   : > { %v1090_v12 = vsel %vm735_vm2, %v3761_v11, 0.0 }
 0x4dd   : > { %1091 = vadd.xlane.f32.xlu0 %v1090_v12  ;;  %v3743_v12 = vld [vmem:[#allocation14] sm:$0xff]  }
 0x540   : > { %v1248_v13 = vpop.xlane.xlu0 %1247 }
 0x541   : > { %v1249_v14 = vsub.f32 %v1242_v61, %v1248_v13 }
 0x543   : > { %v1250_v15 = vmul.f32 1.442695, %v1249_v14 }
 0x544   : > { %v1414_v16 = vpop.xlane.xlu1 %1413 }
 0x545   : > { %3762 = vpow2.f32 %v1250_v15  ;;  %v1415_v17 = vsub.f32 %v1408_v1, %v1414_v16  ;;  %v3281_v16 = vld [vmem:[%s4799_s13] ss:$0 sm:$0xff] }
 0x547   : > { %v1416_v18 = vmul.f32 1.442695, %v1415_v17 }
 0x548   : > { %v1579_v24 = vpop.xlane.xlu1 %1578 }
 0x549   : > { %3764 = vpow2.f32 %v1416_v18  ;;  %v1580_v25 = vsub.f32 %v1573_v4, %v1579_v24  ;;  %v3282_v18 = vld [vmem:[%s4800_s14] ss:$0 sm:$0xff] }
 0x54a   : > { %v3283_v24 = vld [vmem:[%s4865_s15] ss:$0 sm:$0xff] }
 0x54b   : > { %v1581_v27 = vmul.f32 1.442695, %v1580_v25 }
 0x552   : > { %v3763_v19 = vpop.eup %3762 }
 0x553   : > { %v1252_v20 = vsel %vm735_vm2, %v3763_v19, 0.0 }
 0x554   : > { %1253 = vadd.xlane.f32.xlu1 %v1252_v20 }
 0x556   : > { %v3765_v21 = vpop.eup %3764 }
 0x557   : > { %v1418_v22 = vsel %vm735_vm2, %v3765_v21, 0.0 }
 0x558   : > { %1419 = vadd.xlane.f32.xlu0 %v1418_v22  ;;  %v3744_v22 = vld [vmem:[#allocation16 + $0x8] sm:$0xff]  }
 0x565   : > { %1423 = vrot.lane.b32.xlu1 %v4518_v48, %s4133_s26 }
 0x566   : > { %v1092_v23 = vpop.xlane.xlu0 %1091 }
 0x567   : > { %3766 = vrcp.f32 %v1092_v23  ;;  %v3745_v23 = vld [vmem:[#allocation16] sm:$0xff]  }
 0x568   : > { %3768 = vpow2.f32 %v1581_v27 }
 0x56e   : > { %1258 = vrot.lane.b32.xlu0 %v4518_v48, %s4134_s3 }
 0x574   : > { %v3767_v26 = vpop.eup %3766 }
 0x575   : > { %v1094_v28 = vmul.f32 %v3767_v26, %v3761_v11  ;;  %v3769_v29 = vpop.eup %3768  ;;  %v3742_v11 = vld [vmem:[#allocation14 + $0x8] sm:$0xff]  }
 0x576   : > { %v1583_v30 = vsel %vm735_vm2, %v3769_v29, 0.0 }
 0x577   : > { %3453 = vmatmul.mubr.msk.f32.vlgmr.msra.gmra.mxu0 %vm735_vm2, %v1094_v28 }
 0x578   : > { %3462 = vmatprep.mubr.msk.f32.mxu0 %vm4132_vm0, %v4131_v0 }
 0x589   : > { %1584 = vadd.xlane.f32.xlu1 %v1583_v30 }
 0x59a   : > { %1588 = vrot.lane.b32.xlu1 %v4518_v48, %s4135_s20 }
 0x5dd   : > { %v1254_v31 = vpop.xlane.xlu1 %1253 }
 0x5de   : > { %3770 = vrcp.f32 %v1254_v31 }
 0x5e1   : > { %v1420_v32 = vpop.xlane.xlu0 %1419  ;;  %v1424_v36 = vpop.permute.xlu1 %1423 }
 0x5e2   : > { %3772 = vrcp.f32 %v1420_v32 }
 0x5e5   : > { %v1259_v33 = vpop.permute.xlu0 %1258 }
 0x5e6   : > { %3461 = vmatpush3.msra.mxu0 %v1259_v33 }
 0x5e7   : > { %3470 = vmatprep.subr.mxu0 %v4131_v0 }
 0x5eb   : > { %v3771_v34 = vpop.eup %3770 }
 0x5ec   : > { %v1256_v35 = vmul.f32 %v3771_v34, %v3763_v19 }
 0x5ee   : > { %3463 = vmatmul.mubr.msk.f32.vlgmr.msra.gmra.mxu0 %vm735_vm2, %v1256_v35 }
 0x5ef   : > { %v3773_v37 = vpop.eup %3772  ;;  %3471 = vmatpush3.msra.mxu0 %v1424_v36  ;;  %3472 = vmatprep.mubr.msk.f32.mxu0 %vm4132_vm0, %v4131_v0  ;;  %v3287_v36 = vld [vmem:[%s4866_s22] ss:$0 sm:$0xff] }
 0x5f0   : > { %v1422_v38 = vmul.f32 %v3773_v37, %v3765_v21  ;;  %3480 = vmatprep.subr.mxu0 %v4131_v0 }
 0x5f2   : > { %3473 = vmatmul.mubr.msk.f32.vlgmr.msra.gmra.mxu0 %vm735_vm2, %v1422_v38 }
 0x5f3   : > { %3482 = vmatprep.mubr.msk.f32.mxu0 %vm4132_vm0, %v4131_v0 }
 0x612   : > { %v1585_v39 = vpop.xlane.xlu1 %1584 }
 0x613   : > { %3774 = vrcp.f32 %v1585_v39 }
 0x616   : > { %v1589_v40 = vpop.permute.xlu1 %1588 }
 0x617   : > { %3481 = vmatpush3.msra.mxu0 %v1589_v40 }
 0x618   : > { %3493 = vmatprep.subr.bf16.mxu0 %v4131_v0 }
 0x620   : > { %v3775_v41 = vpop.eup %3774 }
 0x621   : > { %v1587_v42 = vmul.f32 %v3775_v41, %v3769_v29 }
 0x623   : > { %3483 = vmatmul.mubr.msk.f32.vlgmr.msra.gmra.mxu0 %vm735_vm2, %v1587_v42 }
 0x624   : > { %3497 = vmatprep.mubr.msk.bf16.mxu0 %vm4132_vm0, %v4131_v0  ;;  %3494 = vmatpush3.bf16.msra.mxu0 %v3742_v11 }
 0x625   : > { %3495 = vmatprep.subr.bf16.mxu0 %v4131_v0 }
 0x628   : > { %3496 = vmatpush3.bf16.msra.mxu0 %v3743_v12 }
 0x629   : > { %3509 = vmatprep.subr.bf16.mxu0 %v4131_v0 }
 0x637   : > { %v1164_v43 = vpop.f32.mrf.mxu0 }
 0x639   : > { %v3454_v44 = vpop.f32.mrf.mxu0 }
 0x6ae   : > { %v1330_v46 = vpop.f32.mrf.mxu0 }
 0x6af   : > { %1665 = vrot.lane.b32.xlu0 %v1330_v46, %s4136_s28 }
 0x6b0   : > { %v3464_v47 = vpop.f32.mrf.mxu0 }
 0x6b2   : > { %v1495_v48 = vpop.f32.mrf.mxu0 }
 0x6b3   : > { %1669 = vrot.lane.b32.xlu1 %v1495_v48, %s4137_s5 }
 0x6b4   : > { %v3474_v49 = vpop.f32.mrf.mxu0 }
 0x6b5   : > { %v3746_v49 = vld [vmem:[#allocation8 + $0x18] sm:$0xff]  }
 0x6e3   : > { %v1660_v51 = vpop.f32.mrf.mxu0 }
 0x6e4   : > { %1673 = vrot.lane.b32.xlu0 %v1660_v51, %s4138_s9  ;;  %v3748_v51 = vld [vmem:[#allocation8 + $0x10] sm:$0xff]  }
 0x6e5   : > { %v3484_v52 = vpop.f32.mrf.mxu0 }
 0x6e6   : > { %v3749_v52 = vld [vmem:[#allocation10 + $0x10] sm:$0xff]  }
 0x721   : > { %v1666_v53 = vpop.permute.xlu0 %1665 }
 0x722   : > { %v1676_v55 = vsel %vm735_vm2, %v1164_v43, %v1666_v53 }
 0x725   : > { %v1670_v54 = vpop.permute.xlu1 %1669 }
 0x726   : > { %v1678_v56 = vsel %vm1677_vm4, %v1676_v55, %v1670_v54 }
 0x756   : > { %v1674_v57 = vpop.permute.xlu0 %1673 }
 0x757   : > { %v1680_v58 = vsel %vm1679_vm5, %v1678_v56, %v1674_v57  ;;  %v3293_v57 = vld [vmem:[%s4797_s11 + $0x1] ss:$0 sm:$0xff] }
 0x758   : > { %v1681_v59 = vpack.c.bf16 %v1680_v58, %v1680_v58 }
 0x75a   : > { %3490 = vmatmul.mubr.msk.bf16.vlgmr.msra.gmra.mxu1 %vm785_vm3, %v1681_v59  ;;  %v3294_v59 = vld [vmem:[%s4798_s12 + $0x1] ss:$0 sm:$0xff] }
 0x75b   : > { %3505 = vmatprep.mubr.msk.bf16.mxu1 %vm4132_vm0, %v4131_v0  ;;  %3502 = vmatpush3.bf16.msra.mxu1 %v3744_v22 }
 0x75c   : > { %3503 = vmatprep.subr.bf16.mxu1 %v4131_v0 }
 0x75f   : > { %3504 = vmatpush3.bf16.msra.mxu1 %v3745_v23 }
 0x760   : > { %3517 = vmatprep.subr.bf16.mxu1 %v4131_v0 }
 0x81a   : > { %v1742_v61 = vpop.f32.mrf.mxu1 }
 0x81b   : > { %v1743_v62 = vadd.f32 %v3277_v60, %v1742_v61 }
 0x81c   : > { %v3491_v63 = vpop.f32.mrf.mxu1 }
 0x81d   : > { %v1748_v1 = vadd.f32 %v1743_v62, %v4474_v7  ;;  %v3750_v62 = vld [vmem:[#allocation11 + $0x18] sm:$0xff]  }
 0x81e   : > { %v1745_v2 = vpop.f32.mrf.mxu1 }
 0x81f   : > { %v1751_v3 = vsel %vm785_vm3, %v1748_v1, 0.0  ;;  %v3296_v2 = vld [vmem:[%s4792_s6 + $0x1] ss:$0 sm:$0xff] }
 0x820   : > { %1752 = vadd.xlane.f32.xlu1 %v1751_v3  ;;  %v3492_v4 = vpop.f32.mrf.mxu1  ;;  %v3301_v3 = vld [vmem:[%s4793_s7 + $0x1] ss:$0 sm:$0xff] }
 0x8a9   : > { %v1753_v5 = vpop.xlane.xlu1 %1752 }
 0x8aa   : > { %v1754_v6 = vmul.f32 0.03125, %v1753_v5 }
 0x8ac   : > { %v1755_v8 = vsub.f32 %v1748_v1, %v1754_v6 }
 0x8ae   : > { %v1756_v9 = vmul.f32 %v1755_v8, %v1755_v8 }
 0x8b0   : > { %v1757_v10 = vsel %vm785_vm3, %v1756_v9, 0.0 }
 0x8b1   : > { %1758 = vadd.xlane.f32.xlu0 %v1757_v10 }
 0x93a   : > { %v1759_v7 = vpop.xlane.xlu0 %1758 }
 0x93b   : > { %v1760_v13 = vmul.f32 0.03125, %v1759_v7 }
 0x93d   : > { %v1761_v14 = vadd.f32 1e-05, %v1760_v13 }
 0x93f   : > { %3776 = vrsqrt.f32 %v1761_v14 }
 0x94c   : > { %v3777_v15 = vpop.eup %3776 }
 0x94d   : > { %v1763_v17 = vmul.f32 %v3777_v15, %v1755_v8  ;;  %v3306_v15 = vld [vmem:[%s4794_s8 + $0x1] ss:$0 sm:$0xff] }
 0x94f   : > { %v1770_v19 = vmul.f32 %v3281_v16, %v1763_v17 }
 0x951   : > { %v1777_v20 = vadd.f32 %v3282_v18, %v1770_v19 }
 0x953   : > { %v1778_v21 = vpack.c.bf16 %v1777_v20, %v1777_v20 }
 0x955   : > { %3498 = vmatmul.mubr.msk.bf16.vlgmr.msra.gmra.mxu0 %vm785_vm3, %v1778_v21 }
 0x956   : > { %3513 = vmatprep.mubr.msk.bf16.mxu0 %vm4132_vm0, %v4131_v0  ;;  %3510 = vmatpush3.bf16.msra.mxu0 %v3746_v49 }
 0x957   : > { %3511 = vmatprep.subr.bf16.mxu0 %v4131_v0 }
 0x95a   : > { %3512 = vmatpush3.bf16.msra.mxu0 %v3748_v51 }
 0x95b   : > { %3525 = vmatprep.subr.bf16.mxu0 %v4131_v0 }
 0xa15   : > { %v1839_v25 = vpop.f32.mrf.mxu0 }
 0xa16   : > { %v1840_v26 = vadd.f32 %v3283_v24, %v1839_v25 }
 0xa17   : > { %v3499_v27 = vpop.f32.mrf.mxu0 }
 0xa18   : > { %v1846_v28 = vmul.f32 0.70710677, %v1840_v26  ;;  %v1845_v32 = vmul.f32 0.5, %v1840_v26 }
 0xa19   : > { %v1842_v29 = vpop.f32.mrf.mxu0 }
 0xa1a   : > { %3778 = verf.f32 %v1846_v28 }
 0xa1b   : > { %v3500_v30 = vpop.f32.mrf.mxu0 }
 0xa27   : > { %v3779_v31 = vpop.eup %3778 }
 0xa28   : > { %v1848_v33 = vadd.f32 1.0, %v3779_v31 }
 0xa2a   : > { %v1849_v34 = vmul.f32 %v1848_v33, %v1845_v32 }
 0xa2c   : > { %v1850_v35 = vpack.c.bf16 %v1849_v34, %v1849_v34 }
 0xa2e   : > { %3506 = vmatmul.mubr.msk.bf16.vlgmr.msra.gmra.mxu1 %vm785_vm3, %v1850_v35 }
 0xa2f   : > { %3521 = vmatprep.mubr.msk.bf16.mxu1 %vm4132_vm0, %v4131_v0  ;;  %3518 = vmatpush3.bf16.msra.mxu1 %v3747_v50 }
 0xa30   : > { %3519 = vmatprep.subr.bf16.mxu1 %v4131_v0 }
 0xa33   : > { %3520 = vmatpush3.bf16.msra.mxu1 %v3749_v52 }
 0xa34   : > { %3533 = vmatprep.subr.mxu1 %v4131_v0 }
 0xaee   : > { %v1911_v37 = vpop.f32.mrf.mxu1 }
 0xaef   : > { %v1912_v38 = vadd.f32 %v3287_v36, %v1911_v37 }
 0xaf0   : > { %v3507_v39 = vpop.f32.mrf.mxu1 }
 0xaf1   : > { %v4608_v40 = vadd.f32 %v1912_v38, %v1748_v1  ;;  %v3751_v1 = vld [vmem:[#allocation11 + $0x10] sm:$0xff]  }
 0xaf2   : > { %v1914_v41 = vpop.f32.mrf.mxu1 }
 0xaf3   : > { %v1922_v42 = vsel %vm785_vm3, %v4608_v40, 0.0 }
 0xaf4   : > { %1923 = vadd.xlane.f32.xlu0 %v1922_v42  ;;  %v3508_v43 = vpop.f32.mrf.mxu1 }
 0xb7d   : > { %v1924_v44 = vpop.xlane.xlu0 %1923 }
 0xb7e   : > { %v1925_v45 = vmul.f32 0.03125, %v1924_v44 }
 0xb80   : > { %v1926_v46 = vsub.f32 %v4608_v40, %v1925_v45 }
 0xb82   : > { %v1927_v47 = vmul.f32 %v1926_v46, %v1926_v46 }
 0xb84   : > { %v1928_v48 = vsel %vm785_vm3, %v1927_v47, 0.0 }
 0xb85   : > { %1929 = vadd.xlane.f32.xlu1 %v1928_v48 }
 0xc0e   : > { %v1930_v53 = vpop.xlane.xlu1 %1929 }
 0xc0f   : > { %v1931_v54 = vmul.f32 0.03125, %v1930_v53 }
 0xc11   : > { %v1932_v55 = vadd.f32 1e-05, %v1931_v54 }
 0xc13   : > { %3780 = vrsqrt.f32 %v1932_v55 }
 0xc20   : > { %v3781_v56 = vpop.eup %3780 }
 0xc21   : > { %v1934_v58 = vmul.f32 %v3781_v56, %v1926_v46 }
 0xc23   : > { %v1941_v60 = vmul.f32 %v3293_v57, %v1934_v58 }
 0xc25   : > { %v1948_v61 = vadd.f32 %v3294_v59, %v1941_v60 }
 0xc27   : > { %v1949_v63 = vpack.c.bf16 %v1948_v61, %v1948_v61 }
 0xc29   : > { %3514 = vmatmul.mubr.msk.bf16.vlgmr.msra.gmra.mxu0 %vm785_vm3, %v1949_v63  ;;  %3522 = vmatmul.mubr.msk.bf16.vlgmr.msra.gmra.mxu1 %vm785_vm3, %v1949_v63 }
 0xc2a   : > { %3526 = vmatpush3.bf16.msra.mxu0 %v3750_v62  ;;  %3529 = vmatprep.mubr.msk.bf16.mxu0 %vm4132_vm0, %v4131_v0 }
 0xc2b   : > { %3527 = vmatprep.subr.bf16.mxu0 %v4131_v0  ;;  %3535 = vmatprep.mubr.msk.f32.mxu1 %vm4132_vm0, %v4131_v0 }
 0xc2e   : > { %3528 = vmatpush3.bf16.msra.mxu0 %v3751_v1 }
 0xc2f   : > { %3538 = vmatprep.subr.mxu0 %v4131_v0 }
 0xc31   : > { %3530 = vmatmul.mubr.msk.bf16.vlgmr.msra.gmra.mxu0 %vm785_vm3, %v1949_v63 }
 0xc32   : > { %3540 = vmatprep.mubr.msk.f32.mxu0 %vm4132_vm0, %v4131_v0 }
 0xce9   : > { %v2012_v4 = vpop.f32.mrf.mxu0  ;;  %v2077_v5 = vpop.f32.mrf.mxu1 }
 0xcea   : > { %v2013_v6 = vadd.f32 %v3296_v2, %v2012_v4  ;;  %v2078_v8 = vadd.f32 %v3301_v3, %v2077_v5 }
 0xceb   : > { %v3515_v9 = vpop.f32.mrf.mxu0  ;;  %v3523_v10 = vpop.f32.mrf.mxu1 }
 0xcec   : > { %v2148_v11 = vmul.f32 0.35355338, %v2013_v6  ;;  %2311 = vrot.lane.b32.xlu0 %v2078_v8, %s4134_s3  ;;  %3534 = vmatpush3.xpose.msk.msra.mxu1 %vm735_vm2, %v2078_v8 }
 0xced   : > { %v2015_v12 = vpop.f32.mrf.mxu0  ;;  %v2080_v7 = vpop.f32.mrf.mxu1  ;;  %3543 = vmatprep.subr.mxu1 %v4131_v0 }
 0xcee   : > { %2309 = vrot.lane.b32.xlu1 %v2148_v11, %s4134_s3 }
 0xcef   : > { %v3516_v13 = vpop.f32.mrf.mxu0  ;;  %v3524_v14 = vpop.f32.mrf.mxu1  ;;  %3536 = vmatmul.mubr.msk.f32.vlgmr.msra.gmra.mxu1 %vm735_vm2, %v2148_v11 }
 0xcf0   : > { %2475 = vrot.lane.b32.xlu0 %v2148_v11, %s4133_s26  ;;  %3545 = vmatprep.mubr.msk.f32.mxu1 %vm4132_vm0, %v4131_v0  ;;  %v3752_v14 = vld [vmem:[#allocation13 + $0x18] sm:$0xff]  }
 0xcf1   : > { %v2142_v16 = vpop.f32.mrf.mxu0 }
 0xcf2   : > { %v4652_v17 = vadd.f32 %v3306_v15, %v2142_v16  ;;  %2477 = vrot.lane.b32.xlu1 %v2078_v8, %s4133_s26 }
 0xcf3   : > { %v3531_v18 = vpop.f32.mrf.mxu0 }
 0xcf4   : > { %2640 = vrot.lane.b32.xlu0 %v2148_v11, %s4135_s20  ;;  %3539 = vmatpush3.msra.mxu0 %v4652_v17 }
 0xcf5   : > { %v2145_v19 = vpop.f32.mrf.mxu0  ;;  %3548 = vmatprep.subr.mxu0 %v4131_v0 }
 0xcf6   : > { %2642 = vrot.lane.b32.xlu1 %v2078_v8, %s4135_s20  ;;  %v3753_v19 = vld [vmem:[#allocation13 + $0x10] sm:$0xff]  }
 0xcf7   : > { %v3532_v20 = vpop.f32.mrf.mxu0 }
 0xd5e   : > { %v2312_v21 = vpop.permute.xlu0 %2311 }
 0xd5f   : > { %3544 = vmatpush3.xpose.msk.msra.mxu1 %vm735_vm2, %v2312_v21 }
 0xd60   : > { %v2310_v22 = vpop.permute.xlu1 %2309  ;;  %3553 = vmatprep.subr.mxu1 %v4131_v0 }
 0xd62   : > { %3546 = vmatmul.mubr.msk.f32.vlgmr.msra.gmra.mxu1 %vm735_vm2, %v2310_v22  ;;  %v2476_v24 = vpop.permute.xlu0 %2475 }
 0xd63   : > { %3555 = vmatprep.mubr.msk.f32.mxu1 %vm4132_vm0, %v4131_v0 }
 0xd64   : > { %v2478_v23 = vpop.permute.xlu1 %2477 }
 0xd65   : > { %3554 = vmatpush3.xpose.msk.msra.mxu1 %vm735_vm2, %v2478_v23 }
 0xd66   : > { %3563 = vmatprep.subr.mxu1 %v4131_v0  ;;  %v2641_v26 = vpop.permute.xlu0 %2640 }
 0xd68   : > { %v2643_v25 = vpop.permute.xlu1 %2642  ;;  %3556 = vmatmul.mubr.msk.f32.vlgmr.msra.gmra.mxu1 %vm735_vm2, %v2476_v24 }
 0xd69   : > { %3564 = vmatpush3.xpose.msk.msra.mxu1 %vm735_vm2, %v2643_v25  ;;  %3565 = vmatprep.mubr.msk.f32.mxu1 %vm4132_vm0, %v4131_v0 }
 0xd6a   : > { %3573 = vmatprep.subr.bf16.mxu1 %v4131_v0 }
 0xd6c   : > { %3566 = vmatmul.mubr.msk.f32.vlgmr.msra.gmra.mxu1 %vm735_vm2, %v2641_v26 }
 0xd6d   : > { %3577 = vmatprep.mubr.msk.bf16.mxu1 %vm4132_vm0, %v4131_v0  ;;  %3574 = vmatpush3.bf16.msra.mxu1 %v3752_v14 }
 0xd6e   : > { %3575 = vmatprep.subr.bf16.mxu1 %v4131_v0 }
 0xd71   : > { %3576 = vmatpush3.bf16.msra.mxu1 %v3753_v19 }
 0xd72   : > { %3589 = vmatprep.subr.bf16.mxu1 %v4131_v0 }
 0xdaf   : > { %v2221_v27 = vpop.f32.mrf.mxu1 }
 0xdb0   : > { %v2225_v28 = vsel %vm735_vm2, %v2221_v27, -inf }
 0xdb1   : > { %2226 = vmax.xlane.f32.xlu1 %v2225_v28  ;;  %v3537_v29 = vpop.f32.mrf.mxu1 }
 0xdb2   : > { %v3323_v29 = vld [vmem:[%s4796_s10 + $0x1] ss:$0 sm:$0xff] }
 0xe22   : > { %v2383_v30 = vpop.f32.mrf.mxu1 }
 0xe23   : > { %v2387_v31 = vsel %vm735_vm2, %v2383_v30, -inf }
 0xe24   : > { %2388 = vmax.xlane.f32.xlu0 %v2387_v31  ;;  %v3547_v32 = vpop.f32.mrf.mxu1 }
 0xe28   : > { %v2549_v33 = vpop.f32.mrf.mxu1 }
 0xe29   : > { %v2553_v34 = vsel %vm735_vm2, %v2549_v33, -inf }
 0xe2a   : > { %2554 = vmax.xlane.f32.xlu0 %v2553_v34  ;;  %v3557_v35 = vpop.f32.mrf.mxu1 }
 0xe2c   : > { %v2714_v36 = vpop.f32.mrf.mxu1 }
 0xe2d   : > { %v2718_v37 = vsel %vm735_vm2, %v2714_v36, -inf }
 0xe2e   : > { %2719 = vmax.xlane.f32.xlu1 %v2718_v37  ;;  %v3567_v38 = vpop.f32.mrf.mxu1 }
 0xe3a   : > { %v2227_v39 = vpop.xlane.xlu1 %2226 }
 0xe3b   : > { %v2228_v41 = vsub.f32 %v2221_v27, %v2227_v39 }
 0xe3d   : > { %v2229_v42 = vmul.f32 1.442695, %v2228_v41 }
 0xe3f   : > { %3782 = vpow2.f32 %v2229_v42 }
 0xe4c   : > { %v3783_v43 = vpop.eup %3782 }
 0xe4d   : > { %v2231_v44 = vsel %vm735_vm2, %v3783_v43, 0.0 }
 0xe4e   : > { %2232 = vadd.xlane.f32.xlu0 %v2231_v44  ;;  %v3755_v44 = vld [vmem:[#allocation14 + $0x10] sm:$0xff]  }
 0xead   : > { %v2389_v45 = vpop.xlane.xlu0 %2388 }
 0xeae   : > { %v2390_v46 = vsub.f32 %v2383_v30, %v2389_v45 }
 0xeb0   : > { %v2391_v47 = vmul.f32 1.442695, %v2390_v46 }
 0xeb2   : > { %3784 = vpow2.f32 %v2391_v47 }
 0xeb3   : > { %v2555_v48 = vpop.xlane.xlu0 %2554 }
 0xeb4   : > { %v2556_v49 = vsub.f32 %v2549_v33, %v2555_v48  ;;  %v3329_v48 = vld [vmem:[%s4799_s13 + $0x1] ss:$0 sm:$0xff] }
 0xeb6   : > { %v2557_v50 = vmul.f32 1.442695, %v2556_v49 }
 0xeb7   : > { %v2720_v56 = vpop.xlane.xlu1 %2719 }
 0xeb8   : > { %3786 = vpow2.f32 %v2557_v50  ;;  %v2721_v57 = vsub.f32 %v2714_v36, %v2720_v56  ;;  %v3330_v50 = vld [vmem:[%s4800_s14 + $0x1] ss:$0 sm:$0xff] }
 0xeb9   : > { %v3332_v56 = vld [vmem:[%s4865_s15 + $0x1] ss:$0 sm:$0xff] }
 0xeba   : > { %v2722_v58 = vmul.f32 1.442695, %v2721_v57 }
 0xebf   : > { %v3785_v51 = vpop.eup %3784 }
 0xec0   : > { %v2393_v52 = vsel %vm735_vm2, %v3785_v51, 0.0 }
 0xec1   : > { %2394 = vadd.xlane.f32.xlu1 %v2393_v52 }
 0xec5   : > { %v3787_v53 = vpop.eup %3786 }
 0xec6   : > { %v2559_v54 = vsel %vm735_vm2, %v3787_v53, 0.0 }
 0xec7   : > { %2560 = vadd.xlane.f32.xlu0 %v2559_v54  ;;  %v3756_v54 = vld [vmem:[#allocation16 + $0x18] sm:$0xff]  }
 0xed2   : > { %2564 = vrot.lane.b32.xlu1 %v4652_v17, %s4133_s26  ;;  %s3080_s26 = sshll.u32 %s729_s25, 4  ;;  %s4744_s26 = int_to_ptr.vmem [resolvable:$true] %s3080_s26 }
 0xed3   : > { %s4038_s29 = scalar_lea.vmem %s4744_s26, 128 }
 0xed4   : > { %p4039_p0 = scmp.ne.s32.totalorder %s4744_s26, %s4038_s29 }
 0xed6   : > { %p4040_p9 = pnand %p4039_p0, %p4868_p5 }
 0xed7   : > { %v2233_v55 = vpop.xlane.xlu0 %2232 }
 0xed8   : > { %3788 = vrcp.f32 %v2233_v55  ;;  %v3757_v55 = vld [vmem:[#allocation16 + $0x10] sm:$0xff]   ;;  %p4041_p12 = pneg %p4040_p9 }
 0xed9   : > { %3790 = vpow2.f32 %v2722_v58 }
 0xedd   : > { %2399 = vrot.lane.b32.xlu0 %v4652_v17, %s4134_s3 }
 0xee5   : > { %v3789_v59 = vpop.eup %3788 }
 0xee6   : > { %v2235_v60 = vmul.f32 %v3789_v59, %v3783_v43  ;;  %v3791_v61 = vpop.eup %3790  ;;  %v3754_v43 = vld [vmem:[#allocation14 + $0x18] sm:$0xff]  }
 0xee7   : > { %v2724_v62 = vsel %vm735_vm2, %v3791_v61, 0.0 }
 0xee8   : > { %3541 = vmatmul.mubr.msk.f32.vlgmr.msra.gmra.mxu0 %vm735_vm2, %v2235_v60 }
 0xee9   : > { %3550 = vmatprep.mubr.msk.f32.mxu0 %vm4132_vm0, %v4131_v0 }
 0xef6   : > { %2725 = vadd.xlane.f32.xlu1 %v2724_v62 }
 0xf07   : > { %2729 = vrot.lane.b32.xlu1 %v4652_v17, %s4135_s20 }
 0xf4a   : > { %v2395_v63 = vpop.xlane.xlu1 %2394 }
 0xf4b   : > { %3792 = vrcp.f32 %v2395_v63 }
 0xf4e   : > { %v2565_v5 = vpop.permute.xlu1 %2564 }
 0xf50   : > { %v2561_v1 = vpop.xlane.xlu0 %2560 }
 0xf51   : > { %3794 = vrcp.f32 %v2561_v1 }
 0xf54   : > { %v2400_v2 = vpop.permute.xlu0 %2399 }
 0xf55   : > { %3549 = vmatpush3.msra.mxu0 %v2400_v2 }
 0xf56   : > { %3558 = vmatprep.subr.mxu0 %v4131_v0 }
 0xf58   : > { %v3793_v3 = vpop.eup %3792 }
 0xf59   : > { %v2397_v4 = vmul.f32 %v3793_v3, %v3785_v51 }
 0xf5b   : > { %3551 = vmatmul.mubr.msk.f32.vlgmr.msra.gmra.mxu0 %vm735_vm2, %v2397_v4  ;;  %v3337_v4 = vld [vmem:[%s4866_s22 + $0x1] ss:$0 sm:$0xff] }
 0xf5c   : > { %3559 = vmatpush3.msra.mxu0 %v2565_v5  ;;  %3560 = vmatprep.mubr.msk.f32.mxu0 %vm4132_vm0, %v4131_v0 }
 0xf5d   : > { %3568 = vmatprep.subr.mxu0 %v4131_v0 }
 0xf5e   : > { %v3795_v6 = vpop.eup %3794 }
 0xf5f   : > { %v2563_v8 = vmul.f32 %v3795_v6, %v3787_v53 }
 0xf61   : > { %3561 = vmatmul.mubr.msk.f32.vlgmr.msra.gmra.mxu0 %vm735_vm2, %v2563_v8 }
 0xf62   : > { %3570 = vmatprep.mubr.msk.f32.mxu0 %vm4132_vm0, %v4131_v0 }
 0xf7f   : > { %v2726_v9 = vpop.xlane.xlu1 %2725 }
 0xf80   : > { %3796 = vrcp.f32 %v2726_v9 }
 0xf83   : > { %v2730_v10 = vpop.permute.xlu1 %2729 }
 0xf84   : > { %3569 = vmatpush3.msra.mxu0 %v2730_v10 }
 0xf85   : > { %3581 = vmatprep.subr.bf16.mxu0 %v4131_v0 }
 0xf8d   : > { %v3797_v11 = vpop.eup %3796 }
 0xf8e   : > { %v2728_v12 = vmul.f32 %v3797_v11, %v3791_v61 }
 0xf90   : > { %3571 = vmatmul.mubr.msk.f32.vlgmr.msra.gmra.mxu0 %vm735_vm2, %v2728_v12 }
 0xf91   : > { %3585 = vmatprep.mubr.msk.bf16.mxu0 %vm4132_vm0, %v4131_v0  ;;  %3582 = vmatpush3.bf16.msra.mxu0 %v3754_v43 }
 0xf92   : > { %3583 = vmatprep.subr.bf16.mxu0 %v4131_v0 }
 0xf95   : > { %3584 = vmatpush3.bf16.msra.mxu0 %v3755_v44 }
 0xfa8   : > { %v2305_v7 = vpop.f32.mrf.mxu0 }
 0xfaa   : > { %v3542_v13 = vpop.f32.mrf.mxu0 }
0x101b   : > { %v2471_v15 = vpop.f32.mrf.mxu0 }
0x101c   : > { %2806 = vrot.lane.b32.xlu0 %v2471_v15, %s4136_s28  ;;  %s4867_s28 = sld [smem:[#allocation38_spill]] }
0x101d   : > { %v3552_v16 = vpop.f32.mrf.mxu0 }
0x1021   : > { %v2636_v17 = vpop.f32.mrf.mxu0 }
0x1022   : > { %2810 = vrot.lane.b32.xlu1 %v2636_v17, %s4137_s5  ;;  %s4742_s5 = scalar_lea.hbm %s4867_s28, %s3342_s24 }
0x1023   : > { %v3562_v18 = vpop.f32.mrf.mxu0 }
0x1050   : > { %v2801_v20 = vpop.f32.mrf.mxu0 }
0x1051   : > { %2814 = vrot.lane.b32.xlu0 %v2801_v20, %s4138_s9  ;;  %s4139_s9 = smov [#allocation17]  }
0x1052   : > { %v3572_v21 = vpop.f32.mrf.mxu0  ;;  %s4042_s17 = sshll.u32 %s4139_s9, 4  ;;  %s4043_s17 = int_to_ptr.vmem [resolvable:$false] %s4042_s17 }
0x1053   : > { %s4044_s23 = scalar_lea.vmem %s4043_s17, 256  ;;  %p4045_p13 = scmp.lt.s32.totalorder %s4744_s26, %s4043_s17 }
0x1054   : > { %p4046_p1 = scmp.lt.s32.totalorder %s4044_s23, %s4038_s29 }
0x1056   : > { %p4047_p3 = por %p4046_p1, %p4045_p13 }
0x1058   : > { %p4048_p4 = pnand %p4047_p3, %p4041_p12 }
0x108e   : > { %v2807_v22 = vpop.permute.xlu0 %2806 }
0x108f   : > { %v2817_v24 = vsel %vm735_vm2, %v2305_v7, %v2807_v22 }
0x1094   : > { %v2811_v23 = vpop.permute.xlu1 %2810 }
0x1095   : > { %v2818_v25 = vsel %vm1677_vm4, %v2817_v24, %v2811_v23 }
0x10c3   : > { %v2815_v26 = vpop.permute.xlu0 %2814 }
0x10c4   : > { %v2819_v27 = vsel %vm1679_vm5, %v2818_v25, %v2815_v26 }
0x10c5   : > { %v2820_v28 = vpack.c.bf16 %v2819_v27, %v2819_v27 }
0x10c7   : > { %3578 = vmatmul.mubr.msk.bf16.vlgmr.msra.gmra.mxu1 %vm785_vm3, %v2820_v28 }
0x10c8   : > { %3593 = vmatprep.mubr.msk.bf16.mxu1 %vm4132_vm0, %v4131_v0  ;;  %3590 = vmatpush3.bf16.msra.mxu1 %v3756_v54 }
0x10c9   : > { %3591 = vmatprep.subr.bf16.mxu1 %v4131_v0 }
0x10cc   : > { %3592 = vmatpush3.bf16.msra.mxu1 %v3757_v55 }
0x1187   : > { %v2883_v30 = vpop.f32.mrf.mxu1 }
0x1188   : > { %v2884_v31 = vadd.f32 %v3323_v29, %v2883_v30 }
0x1189   : > { %v3579_v32 = vpop.f32.mrf.mxu1 }
0x118a   : > { %v2889_v33 = vadd.f32 %v2884_v31, %v4608_v40 }
0x118b   : > { %v2886_v34 = vpop.f32.mrf.mxu1 }
0x118c   : > { %v2894_v35 = vsel %vm785_vm3, %v2889_v33, 0.0 }
0x118d   : > { %2895 = vadd.xlane.f32.xlu1 %v2894_v35  ;;  %v3580_v36 = vpop.f32.mrf.mxu1 }
0x1216   : > { %v2896_v37 = vpop.xlane.xlu1 %2895 }
0x1217   : > { %v2897_v38 = vmul.f32 0.03125, %v2896_v37 }
0x1219   : > { %v2898_v39 = vsub.f32 %v2889_v33, %v2897_v38 }
0x121b   : > { %v2899_v41 = vmul.f32 %v2898_v39, %v2898_v39 }
0x121d   : > { %v2900_v42 = vsel %vm785_vm3, %v2899_v41, 0.0 }
0x121e   : > { %2901 = vadd.xlane.f32.xlu0 %v2900_v42 }
0x12a7   : > { %v2902_v45 = vpop.xlane.xlu0 %2901 }
0x12a8   : > { %v2903_v40 = vmul.f32 0.03125, %v2902_v45 }
0x12aa   : > { %v2904_v46 = vadd.f32 1e-05, %v2903_v40 }
0x12ac   : > { %3798 = vrsqrt.f32 %v2904_v46 }
0x12b9   : > { %v3799_v47 = vpop.eup %3798 }
0x12ba   : > { %v2906_v49 = vmul.f32 %v3799_v47, %v2898_v39 }
0x12bc   : > { %v2913_v51 = vmul.f32 %v3329_v48, %v2906_v49 }
0x12be   : > { %v2920_v52 = vadd.f32 %v3330_v50, %v2913_v51 }
0x12c0   : > { %v2921_v53 = vpack.c.bf16 %v2920_v52, %v2920_v52 }
0x12c2   : > { %3586 = vmatmul.mubr.msk.bf16.vlgmr.msra.gmra.mxu0 %vm785_vm3, %v2921_v53 }
0x1382   : > { %v2984_v57 = vpop.f32.mrf.mxu0 }
0x1383   : > { %v2985_v58 = vadd.f32 %v3332_v56, %v2984_v57 }
0x1384   : > { %v3587_v59 = vpop.f32.mrf.mxu0 }
0x1385   : > { %v2991_v60 = vmul.f32 0.70710677, %v2985_v58  ;;  %v2990_v1 = vmul.f32 0.5, %v2985_v58 }
0x1386   : > { %v2987_v61 = vpop.f32.mrf.mxu0 }
0x1387   : > { %3800 = verf.f32 %v2991_v60 }
0x1388   : > { %v3588_v62 = vpop.f32.mrf.mxu0 }
0x1394   : > { %v3801_v63 = vpop.eup %3800 }
0x1395   : > { %v2993_v2 = vadd.f32 1.0, %v3801_v63 }
0x1397   : > { %v2994_v3 = vmul.f32 %v2993_v2, %v2990_v1 }
0x1399   : > { %v2995_v0 = vpack.c.bf16 %v2994_v3, %v2994_v3 }
0x139b   : > { %3594 = vmatmul.mubr.msk.bf16.vlgmr.msra.gmra.mxu1 %vm785_vm3, %v2995_v0 }
0x145b   : > { %v3058_v5 = vpop.f32.mrf.mxu1 }
0x145c   : > { %v3059_v6 = vadd.f32 %v3337_v4, %v3058_v5 }
0x145d   : > { %v3595_v8 = vpop.f32.mrf.mxu1 }
0x145e   : > { %v3064_v9 = vadd.f32 %v3059_v6, %v2889_v33 }
0x145f   : > { %v3061_v10 = vpop.f32.mrf.mxu1 }
0x1460   : > { %3065 = vst.msk [vmem:[%s729_s25] sm:$0xff] %vm785_vm3, %v3064_v9 }
0x1461   : > { %v3596_v11 = vpop.f32.mrf.mxu1 }
0x1462   : > { %4051 = shalt.err (!%p4048_p4)
}
0x1463   : > { %s4052_s19 = scalar_lea.hbm %s4742_s5, 128  ;;  %s4056_s24 = scalar_lea.hbm %s4867_s28, 256 }
0x1464   : > { %p4053_p6 = scmp.ne.s32.totalorder %s4742_s5, %s4052_s19  ;;  %p4057_p7 = scmp.lt.s32.totalorder %s4742_s5, %s4867_s28 }
0x1465   : > { %p4058_p10 = scmp.lt.s32.totalorder %s4056_s24, %s4052_s19 }
0x1466   : > { %p4054_p8 = pnand %p4053_p6, %p4868_p5 }
0x1467   : > { %p4059_p2 = por %p4058_p10, %p4057_p7 }
0x1468   : > { %p4055_p11 = pneg %p4054_p8 }
0x146a   : > { %p4060_p0 = pnand %p4059_p2, %p4055_p11 }
0x146c   : > { %4063 = shalt.err (!%p4060_p0)
}
0x146d   : > { %3631 = dma.vmem_to_hbm [thread:$0]  (%p4868_p5), %s4744_s26, 128, %s4742_s5, %s3067_s2  }
0x146e PF: > { %s3092_s20 = sand.u32 1, %s4106_s0   ;;  %p4869_p9 = scmp.ne.s32.totalorder %s4852_s16, 0 }
0x146f   : > { %p4870_p12 = scmp.ge.s32.totalorder %s4118_s21, 2  ;;  %s3093_s29 = scalar_lea.sflag [#allocation4], %s3092_s20 }
0x1471   : > { %p3663_p13 = pnand %p4870_p12, %p4869_p9 }
0x1473   : > { %p3664_p1 = pneg %p3663_p13 }
0x1475   : > { %4101 = dma.done.wait (%p3664_p1), %s3093_s29, 128  }
0x1476   : > { %4103 = vsyncadd (%p3664_p1), %s3093_s29, 4294967168  ;;  %s4871_s21 = sld [smem:[#allocation25_spill]]  ;;  %s4874_s0 = smov %s4110_s30 }
0x1477   : > { %s4872_s9 = sld [smem:[#allocation24_spill]] }
0x1478   : > { %s4873_s20 = sld [smem:[#allocation26_spill]] }
0x147c   : > { %p36_p3 = scmp.ge.s32.totalorder %s4871_s21, 4  }
0x147d   : > { %s4875_s30 = smov %s4872_s9 }
0x147e   :  { %38 = sbr.rel (!%p36_p3) target bundleno = 22 (0x16), region = 189 }
0x1483   :  { %3098 = vsyncpa [#allocation3], 1 }
0x1484   :  { %3100 = vsyncpa [#allocation3 + $0x1], 1 }
0x1485   :  { %3101 = vsyncpa [#allocation6], 1 }
0x1486   :  { %3102 = vsyncpa [#allocation9], 1 }
0x1487   :  { %3103 = vsyncpa [#allocation12], 1 }
0x1488   :  { %3104 = vsyncpa [#allocation15], 1 }
0x1489   :  { %3105 = vsyncpa [#allocation4], 1 }
0x148a   :  { %3107 = vsyncpa [#allocation4 + $0x1], 1 }

</bundles_post_ra>
